<compile_context>
chip_gen: v7x
topology: tpu7x:2x2x1
jax: 0.10.0
libtpu: 0.0.40
codegen_flags: <defaults>
</compile_context>

<pallas_src>
import functools

import jax
import jax.numpy as jnp
from jax.experimental import pallas as pl
from jax.experimental.pallas import tpu as pltpu


def pam_kernel(xq_ref, xkv_ref, wq_ref, bq_ref, wkv_ref, bkv_ref, gamma_ref,
               out_ref, q_sc, m_sc, l_sc, acc_sc, *, cqp):
    # xq_ref:  (1, C, TQ)  x slice for this query tile (also the residual)
    # xkv_ref: (1, C, TK)  x slice for this key/value tile
    # wq_ref:  (Cqp, C)    zero-padded query weights, bq_ref: (Cqp, 1)
    # wkv_ref: (Cqp+C, C)  stacked [key ; value] weights, bkv_ref: (Cqp+C, 1)
    # gamma_ref: (1,) scalar in SMEM
    ki = pl.program_id(2)

    @pl.when(ki == 0)
    def _init():
        # Query projection for this query tile, cached across the KV loop.
        q_sc[...] = (
            jnp.dot(wq_ref[...], xq_ref[0], preferred_element_type=jnp.float32)
            + bq_ref[...])
        m_sc[...] = jnp.full_like(m_sc, -jnp.inf)
        l_sc[...] = jnp.zeros_like(l_sc)
        acc_sc[...] = jnp.zeros_like(acc_sc)

    # Fused key + value projection for this KV tile: (Cqp + C, TK).
    kv = (jnp.dot(wkv_ref[...], xkv_ref[0], preferred_element_type=jnp.float32)
          + bkv_ref[...])
    k = kv[:cqp]          # (Cqp, TK)  sublane-aligned slice
    v = kv[cqp:]          # (C,   TK)

    # Energy tile with keys on sublanes and queries on lanes:
    #   s[j, i] = <k[:, j], q[:, i]>  == energy[i, j] of the reference.
    # Contract the channel axis directly -- no materialized transpose.
    s = jax.lax.dot_general(
        k, q_sc[...],
        dimension_numbers=(((0,), (0,)), ((), ())),
        preferred_element_type=jnp.float32)               # (TK, TQ)

    # Online softmax over the key axis (axis 0), normalization deferred.
    m_prev = m_sc[...]                                    # (1, TQ)
    m_new = jnp.maximum(m_prev, jnp.max(s, axis=0, keepdims=True))
    alpha = jnp.exp(m_prev - m_new)                       # (1, TQ)
    p = jnp.exp(s - m_new)                                # (TK, TQ), unnormalized
    l_sc[...] = alpha * l_sc[...] + jnp.sum(p, axis=0, keepdims=True)
    acc_sc[...] = alpha * acc_sc[...] + jnp.dot(
        v, p, preferred_element_type=jnp.float32)         # (C, TQ)
    m_sc[...] = m_new

    @pl.when(ki == pl.num_programs(2) - 1)
    def _finish():
        l = l_sc[...]
        inv_l = pl.reciprocal(l, approx=True)             # EUP slot
        inv_l = inv_l * (2.0 - l * inv_l)                 # one Newton step -> ~f32 accurate
        out_ref[0] = gamma_ref[0] * (acc_sc[...] * inv_l) + xq_ref[0]


def pam_module(x, wq, bq, wk, bk, wv, bv, gamma, *, tq=256, tk=256):
    """x: (B, C, W, H) float32.  Returns (B, C, W, H)."""
    B, C, W, H = x.shape
    N = W * H
    Cq = wq.shape[0]
    Cqp = ((Cq + 7) // 8) * 8        # pad q/k channels to a sublane multiple

    TQ = min(tq, N)
    TK = min(tk, N)
    assert N % TQ == 0 and N % TK == 0, "spatial size must divide the tiles"

    f32 = jnp.float32
    x_flat = x.reshape(B, C, N).astype(f32)

    # Zero-pad query/key projections up to Cqp rows (padding rows produce
    # all-zero q/k channels and contribute 0 to the energy contraction).
    wq_p = jnp.zeros((Cqp, C), f32).at[:Cq].set(wq.astype(f32))
    bq_p = jnp.zeros((Cqp, 1), f32).at[:Cq, 0].set(bq.astype(f32))
    wk_p = jnp.zeros((Cqp, C), f32).at[:Cq].set(wk.astype(f32))
    bk_p = jnp.zeros((Cqp, 1), f32).at[:Cq, 0].set(bk.astype(f32))

    # Stack key + value projections into a single matmul per KV tile.
    wkv = jnp.concatenate([wk_p, wv.astype(f32)], axis=0)            # (Cqp+C, C)
    bkv = jnp.concatenate([bk_p, bv.reshape(C, 1).astype(f32)], axis=0)

    gamma1 = gamma.reshape(1).astype(f32)

    nq = N // TQ
    nk = N // TK

    kernel = functools.partial(pam_kernel, cqp=Cqp)

    out_flat = pl.pallas_call(
        kernel,
        out_shape=jax.ShapeDtypeStruct((B, C, N), f32),
        grid_spec=pltpu.PrefetchScalarGridSpec(
            num_scalar_prefetch=0,
            grid=(B, nq, nk),
            in_specs=[
                pl.BlockSpec((1, C, TQ), lambda b, qi, ki: (b, 0, qi)),   # x (query cols)
                pl.BlockSpec((1, C, TK), lambda b, qi, ki: (b, 0, ki)),   # x (key cols)
                pl.BlockSpec((Cqp, C), lambda b, qi, ki: (0, 0)),         # wq (padded)
                pl.BlockSpec((Cqp, 1), lambda b, qi, ki: (0, 0)),         # bq (padded)
                pl.BlockSpec((Cqp + C, C), lambda b, qi, ki: (0, 0)),     # [wk; wv]
                pl.BlockSpec((Cqp + C, 1), lambda b, qi, ki: (0, 0)),     # [bk; bv]
                pl.BlockSpec(memory_space=pltpu.MemorySpace.SMEM),        # gamma scalar
            ],
            out_specs=pl.BlockSpec((1, C, TQ), lambda b, qi, ki: (b, 0, qi)),
            scratch_shapes=[
                pltpu.VMEM((Cqp, TQ), f32),   # cached query projection
                pltpu.VMEM((1, TQ), f32),     # running max  m
                pltpu.VMEM((1, TQ), f32),     # running sum  l
                pltpu.VMEM((C, TQ), f32),     # unnormalized output accumulator
            ],
        ),
        compiler_params=pltpu.CompilerParams(
            dimension_semantics=("parallel", "parallel", "arbitrary")),
    )(x_flat, x_flat, wq_p, bq_p, wkv, bkv, gamma1)

    return out_flat.reshape(B, C, W, H)


def pam_reference(x, wq, bq, wk, bk, wv, bv, gamma):
    """Pure-JAX reference mirroring the PyTorch forward exactly."""
    B, C, W, H = x.shape
    N = W * H
    xf = x.reshape(B, C, N)
    q = jnp.einsum('oc,bcn->bon', wq, xf) + bq[None, :, None]   # (B, Cq, N)
    k = jnp.einsum('oc,bcn->bon', wk, xf) + bk[None, :, None]   # (B, Cq, N)
    v = jnp.einsum('oc,bcn->bon', wv, xf) + bv[None, :, None]   # (B, C,  N)
    energy = jnp.einsum('bci,bcj->bij', q, k)                   # (B, N, N)
    attn = jax.nn.softmax(energy, axis=-1)
    out = jnp.einsum('bcj,bij->bci', v, attn)                   # (B, C, N)
    out = gamma.reshape(()) * out + xf
    return out.reshape(B, C, W, H)


if __name__ == "__main__":
    key = jax.random.PRNGKey(0)
    B, C, W, H = 2, 16, 16, 16          # in_dim = 16 -> query/key channels = 2
    Cq = C // 8

    k_x, k_wq, k_bq, k_wk, k_bk, k_wv, k_bv = jax.random.split(key, 7)
    x = jax.random.normal(k_x, (B, C, W, H), dtype=jnp.float32)

    # 1x1 conv weights: PyTorch shape (out, in, 1, 1) -> flattened to (out, in)
    wq = jax.random.normal(k_wq, (Cq, C), dtype=jnp.float32) * 0.1
    bq = jax.random.normal(k_bq, (Cq,), dtype=jnp.float32) * 0.1
    wk = jax.random.normal(k_wk, (Cq, C), dtype=jnp.float32) * 0.1
    bk = jax.random.normal(k_bk, (Cq,), dtype=jnp.float32) * 0.1
    wv = jax.random.normal(k_wv, (C, C), dtype=jnp.float32) * 0.1
    bv = jax.random.normal(k_bv, (C,), dtype=jnp.float32) * 0.1
    # nn.Parameter(torch.zeros(1)) in __init__; use a nonzero deterministic
    # value so the attention path actually contributes to the output.
    gamma = jnp.array([0.5], dtype=jnp.float32)

    ref = pam_reference(x, wq, bq, wk, bk, wv, bv, gamma)

    # Single-tile path (N == TQ == TK).
    out1 = jax.block_until_ready(pam_module(x, wq, bq, wk, bk, wv, bv, gamma))
    # Multi-tile flash path (exercises online-softmax accumulation, nk > 1).
    out2 = jax.block_until_ready(
        pam_module(x, wq, bq, wk, bk, wv, bv, gamma, tq=128, tk=128))

    assert out1.shape == (B, C, W, H)
    assert jnp.allclose(out1, ref, rtol=1e-4, atol=1e-4), \
        f"max abs err (single tile) = {jnp.max(jnp.abs(out1 - ref))}"
    assert jnp.allclose(out2, ref, rtol=1e-4, atol=1e-4), \
        f"max abs err (tiled) = {jnp.max(jnp.abs(out2 - ref))}"

    print("KERNEL_OK")
</pallas_src>

<mosaic_0001>
module attributes {stable_mosaic.version = 11 : i64} {
  func.func @pam_kernel(%arg0: i32, %arg1: i32, %arg2: i32, %arg3: memref<1x16x256xf32, #tpu.memory_space<vmem>>, %arg4: memref<1x16x256xf32, #tpu.memory_space<vmem>>, %arg5: memref<8x16xf32, #tpu.memory_space<vmem>>, %arg6: memref<8x1xf32, #tpu.memory_space<vmem>>, %arg7: memref<24x16xf32, #tpu.memory_space<vmem>>, %arg8: memref<24x1xf32, #tpu.memory_space<vmem>>, %arg9: memref<1xf32, #tpu.memory_space<smem>>, %arg10: memref<1x16x256xf32, #tpu.memory_space<vmem>>, %arg11: memref<8x256xf32, #tpu.memory_space<vmem>>, %arg12: memref<1x256xf32, #tpu.memory_space<vmem>>, %arg13: memref<1x256xf32, #tpu.memory_space<vmem>>, %arg14: memref<16x256xf32, #tpu.memory_space<vmem>>) attributes {dimension_semantics = [#tpu.dimension_semantics<parallel>, #tpu.dimension_semantics<parallel>, #tpu.dimension_semantics<arbitrary>], iteration_bounds = array<i64: 2, 1, 1>, scalar_prefetch = 0 : i64, scratch_operands = 4 : i64, tpu.core_type = #tpu.core_type<tc>, window_params = [{transform_indices = @transform_0, window_bounds = array<i64: 1, 16, 256>}, {transform_indices = @transform_1, window_bounds = array<i64: 1, 16, 256>}, {pipeline_mode = #tpu.pipeline_mode<synchronous>, transform_indices = @transform_2, window_bounds = array<i64: 8, 16>}, {pipeline_mode = #tpu.pipeline_mode<synchronous>, transform_indices = @transform_3, window_bounds = array<i64: 8, 1>}, {pipeline_mode = #tpu.pipeline_mode<synchronous>, transform_indices = @transform_4, window_bounds = array<i64: 24, 16>}, {pipeline_mode = #tpu.pipeline_mode<synchronous>, transform_indices = @transform_5, window_bounds = array<i64: 24, 1>}, {transform_indices = @transform_6, window_bounds = array<i64: 1>}, {transform_indices = @transform_7, window_bounds = array<i64: 1, 16, 256>}]} {
    %c0_i32 = arith.constant 0 : i32
    %0 = arith.cmpi eq, %arg2, %c0_i32 : i32
    %1 = arith.extui %0 : i1 to i32
    %c0_i32_0 = arith.constant 0 : i32
    %2 = arith.cmpi ne, %1, %c0_i32_0 : i32
    scf.if %2 {
      %c0_27 = arith.constant 0 : index
      %c0_28 = arith.constant 0 : index
      %39 = vector.load %arg5[%c0_27, %c0_28] : memref<8x16xf32, #tpu.memory_space<vmem>>, vector<8x16xf32>
      %c0_29 = arith.constant 0 : index
      %c0_30 = arith.constant 0 : index
      %c0_31 = arith.constant 0 : index
      %40 = vector.load %arg3[%c0_29, %c0_30, %c0_31] : memref<1x16x256xf32, #tpu.memory_space<vmem>>, vector<1x16x256xf32>
      %41 = vector.shape_cast %40 : vector<1x16x256xf32> to vector<16x256xf32>
      %cst_32 = arith.constant dense<0.000000e+00> : vector<8x256xf32>
      %42 = tpu.matmul %39, %41, %cst_32 {dimension_numbers = #tpu.dot_dimension_numbers<[1], [0], [0], [1], [0, 0, 1, 1], [], []>} : vector<8x16xf32>, vector<16x256xf32>, vector<8x256xf32> -> vector<8x256xf32>
      %c0_33 = arith.constant 0 : index
      %c0_34 = arith.constant 0 : index
      %43 = vector.load %arg6[%c0_33, %c0_34] : memref<8x1xf32, #tpu.memory_space<vmem>>, vector<8x1xf32>
      %44 = vector.broadcast %43 : vector<8x1xf32> to vector<8x256xf32>
      %45 = arith.addf %42, %44 : vector<8x256xf32>
      %c0_35 = arith.constant 0 : index
      %c0_36 = arith.constant 0 : index
      %46 = vector.load %arg11[%c0_35, %c0_36] : memref<8x256xf32, #tpu.memory_space<vmem>>, vector<8x256xf32>
      tpu.vector_store %arg11[%c0_35, %c0_36], %45 {strides = array<i32>} : memref<8x256xf32, #tpu.memory_space<vmem>>, vector<8x256xf32>,
      %cst_37 = arith.constant 0xFF800000 : f32
      %47 = vector.broadcast %cst_37 : f32 to vector<1x256xf32>
      %c0_38 = arith.constant 0 : index
      %c0_39 = arith.constant 0 : index
      %48 = vector.load %arg12[%c0_38, %c0_39] : memref<1x256xf32, #tpu.memory_space<vmem>>, vector<1x256xf32>
      tpu.vector_store %arg12[%c0_38, %c0_39], %47 {strides = array<i32>} : memref<1x256xf32, #tpu.memory_space<vmem>>, vector<1x256xf32>,
      %cst_40 = arith.constant 0.000000e+00 : f32
      %49 = vector.broadcast %cst_40 : f32 to vector<1x256xf32>
      %c0_41 = arith.constant 0 : index
      %c0_42 = arith.constant 0 : index
      %50 = vector.load %arg13[%c0_41, %c0_42] : memref<1x256xf32, #tpu.memory_space<vmem>>, vector<1x256xf32>
      tpu.vector_store %arg13[%c0_41, %c0_42], %49 {strides = array<i32>} : memref<1x256xf32, #tpu.memory_space<vmem>>, vector<1x256xf32>,
      %cst_43 = arith.constant 0.000000e+00 : f32
      %51 = vector.broadcast %cst_43 : f32 to vector<16x256xf32>
      %c0_44 = arith.constant 0 : index
      %c0_45 = arith.constant 0 : index
      %52 = vector.load %arg14[%c0_44, %c0_45] : memref<16x256xf32, #tpu.memory_space<vmem>>, vector<16x256xf32>
      tpu.vector_store %arg14[%c0_44, %c0_45], %51 {strides = array<i32>} : memref<16x256xf32, #tpu.memory_space<vmem>>, vector<16x256xf32>,
    } else {
    }
    %c0 = arith.constant 0 : index
    %c0_1 = arith.constant 0 : index
    %3 = vector.load %arg7[%c0, %c0_1] : memref<24x16xf32, #tpu.memory_space<vmem>>, vector<24x16xf32>
    %c0_2 = arith.constant 0 : index
    %c0_3 = arith.constant 0 : index
    %c0_4 = arith.constant 0 : index
    %4 = vector.load %arg4[%c0_2, %c0_3, %c0_4] : memref<1x16x256xf32, #tpu.memory_space<vmem>>, vector<1x16x256xf32>
    %5 = vector.shape_cast %4 : vector<1x16x256xf32> to vector<16x256xf32>
    %cst = arith.constant dense<0.000000e+00> : vector<24x256xf32>
    %6 = tpu.matmul %3, %5, %cst {dimension_numbers = #tpu.dot_dimension_numbers<[1], [0], [0], [1], [0, 0, 1, 1], [], []>} : vector<24x16xf32>, vector<16x256xf32>, vector<24x256xf32> -> vector<24x256xf32>
    %c0_5 = arith.constant 0 : index
    %c0_6 = arith.constant 0 : index
    %7 = vector.load %arg8[%c0_5, %c0_6] : memref<24x1xf32, #tpu.memory_space<vmem>>, vector<24x1xf32>
    %8 = vector.broadcast %7 : vector<24x1xf32> to vector<24x256xf32>
    %9 = arith.addf %6, %8 : vector<24x256xf32>
    %10 = vector.extract_strided_slice %9 {offsets = [0, 0], sizes = [8, 256], strides = [1, 1]} : vector<24x256xf32> to vector<8x256xf32>
    %11 = vector.extract_strided_slice %9 {offsets = [8, 0], sizes = [16, 256], strides = [1, 1]} : vector<24x256xf32> to vector<16x256xf32>
    %c0_7 = arith.constant 0 : index
    %c0_8 = arith.constant 0 : index
    %12 = vector.load %arg11[%c0_7, %c0_8] : memref<8x256xf32, #tpu.memory_space<vmem>>, vector<8x256xf32>
    %cst_9 = arith.constant dense<0.000000e+00> : vector<256x256xf32>
    %13 = tpu.matmul %10, %12, %cst_9 {dimension_numbers = #tpu.dot_dimension_numbers<[0], [0], [1], [1], [0, 1, 1, 1], [], []>} : vector<8x256xf32>, vector<8x256xf32>, vector<256x256xf32> -> vector<256x256xf32>
    %c0_10 = arith.constant 0 : index
    %c0_11 = arith.constant 0 : index
    %14 = vector.load %arg12[%c0_10, %c0_11] : memref<1x256xf32, #tpu.memory_space<vmem>>, vector<1x256xf32>
    %cst_12 = arith.constant dense<0xFF800000> : vector<256xf32>
    %15 = vector.multi_reduction <maximumf>, %13, %cst_12 [0] : vector<256x256xf32> to vector<256xf32>
    %16 = vector.shape_cast %15 : vector<256xf32> to vector<1x256xf32>
    %17 = arith.maximumf %14, %16 : vector<1x256xf32>
    %18 = arith.subf %14, %17 : vector<1x256xf32>
    %19 = math.exp %18 : vector<1x256xf32>
    %20 = vector.broadcast %17 : vector<1x256xf32> to vector<256x256xf32>
    %21 = arith.subf %13, %20 : vector<256x256xf32>
    %22 = math.exp %21 : vector<256x256xf32>
    %c0_13 = arith.constant 0 : index
    %c0_14 = arith.constant 0 : index
    %23 = vector.load %arg13[%c0_13, %c0_14] : memref<1x256xf32, #tpu.memory_space<vmem>>, vector<1x256xf32>
    %24 = arith.mulf %19, %23 : vector<1x256xf32>
    %cst_15 = arith.constant dense<0.000000e+00> : vector<256xf32>
    %25 = vector.multi_reduction <add>, %22, %cst_15 [0] : vector<256x256xf32> to vector<256xf32>
    %26 = vector.shape_cast %25 : vector<256xf32> to vector<1x256xf32>
    %27 = arith.addf %24, %26 : vector<1x256xf32>
    %c0_16 = arith.constant 0 : index
    %c0_17 = arith.constant 0 : index
    %28 = vector.load %arg13[%c0_16, %c0_17] : memref<1x256xf32, #tpu.memory_space<vmem>>, vector<1x256xf32>
    tpu.vector_store %arg13[%c0_16, %c0_17], %27 {strides = array<i32>} : memref<1x256xf32, #tpu.memory_space<vmem>>, vector<1x256xf32>,
    %c0_18 = arith.constant 0 : index
    %c0_19 = arith.constant 0 : index
    %29 = vector.load %arg14[%c0_18, %c0_19] : memref<16x256xf32, #tpu.memory_space<vmem>>, vector<16x256xf32>
    %30 = vector.broadcast %19 : vector<1x256xf32> to vector<16x256xf32>
    %31 = arith.mulf %30, %29 : vector<16x256xf32>
    %cst_20 = arith.constant dense<0.000000e+00> : vector<16x256xf32>
    %32 = tpu.matmul %11, %22, %cst_20 {dimension_numbers = #tpu.dot_dimension_numbers<[1], [0], [0], [1], [0, 0, 1, 1], [], []>} : vector<16x256xf32>, vector<256x256xf32>, vector<16x256xf32> -> vector<16x256xf32>
    %33 = arith.addf %31, %32 : vector<16x256xf32>
    %c0_21 = arith.constant 0 : index
    %c0_22 = arith.constant 0 : index
    %34 = vector.load %arg14[%c0_21, %c0_22] : memref<16x256xf32, #tpu.memory_space<vmem>>, vector<16x256xf32>
    tpu.vector_store %arg14[%c0_21, %c0_22], %33 {strides = array<i32>} : memref<16x256xf32, #tpu.memory_space<vmem>>, vector<16x256xf32>,
    %c0_23 = arith.constant 0 : index
    %c0_24 = arith.constant 0 : index
    %35 = vector.load %arg12[%c0_23, %c0_24] : memref<1x256xf32, #tpu.memory_space<vmem>>, vector<1x256xf32>
    tpu.vector_store %arg12[%c0_23, %c0_24], %17 {strides = array<i32>} : memref<1x256xf32, #tpu.memory_space<vmem>>, vector<1x256xf32>,
    %c0_i32_25 = arith.constant 0 : i32
    %36 = arith.cmpi eq, %arg2, %c0_i32_25 : i32
    %37 = arith.extui %36 : i1 to i32
    %c0_i32_26 = arith.constant 0 : i32
    %38 = arith.cmpi ne, %37, %c0_i32_26 : i32
    scf.if %38 {
      %c0_27 = arith.constant 0 : index
      %c0_28 = arith.constant 0 : index
      %39 = vector.load %arg13[%c0_27, %c0_28] : memref<1x256xf32, #tpu.memory_space<vmem>>, vector<1x256xf32>
      %40 = tpu.reciprocal %39 {approx = true} : vector<1x256xf32> -> vector<1x256xf32>
      %41 = arith.mulf %39, %40 : vector<1x256xf32>
      %cst_29 = arith.constant 2.000000e+00 : f32
      %42 = vector.broadcast %cst_29 : f32 to vector<1x256xf32>
      %43 = arith.subf %42, %41 : vector<1x256xf32>
      %44 = arith.mulf %40, %43 : vector<1x256xf32>
      %c0_30 = arith.constant 0 : index
      %45 = memref.load %arg9[%c0_30] : memref<1xf32, #tpu.memory_space<smem>>
      %c0_31 = arith.constant 0 : index
      %c0_32 = arith.constant 0 : index
      %46 = vector.load %arg14[%c0_31, %c0_32] : memref<16x256xf32, #tpu.memory_space<vmem>>, vector<16x256xf32>
      %47 = vector.broadcast %44 : vector<1x256xf32> to vector<16x256xf32>
      %48 = arith.mulf %46, %47 : vector<16x256xf32>
      %49 = vector.broadcast %45 : f32 to vector<16x256xf32>
      %50 = arith.mulf %49, %48 : vector<16x256xf32>
      %c0_33 = arith.constant 0 : index
      %c0_34 = arith.constant 0 : index
      %c0_35 = arith.constant 0 : index
      %51 = vector.load %arg3[%c0_33, %c0_34, %c0_35] : memref<1x16x256xf32, #tpu.memory_space<vmem>>, vector<1x16x256xf32>
      %52 = vector.shape_cast %51 : vector<1x16x256xf32> to vector<16x256xf32>
      %53 = arith.addf %50, %52 : vector<16x256xf32>
      %c0_36 = arith.constant 0 : index
      %c0_37 = arith.constant 0 : index
      %c0_38 = arith.constant 0 : index
      %54 = vector.load %arg10[%c0_36, %c0_37, %c0_38] : memref<1x16x256xf32, #tpu.memory_space<vmem>>, vector<1x16x256xf32>
      %55 = vector.shape_cast %54 : vector<1x16x256xf32> to vector<16x256xf32>
      %56 = vector.shape_cast %53 : vector<16x256xf32> to vector<1x16x256xf32>
      tpu.vector_store %arg10[%c0_36, %c0_37, %c0_38], %56 {strides = array<i32>} : memref<1x16x256xf32, #tpu.memory_space<vmem>>, vector<1x16x256xf32>,
    } else {
    }
    return
  }
  func.func @transform_0(%arg0: i32, %arg1: i32, %arg2: i32) -> (i32, i32, i32) {
    %c0_i32 = arith.constant 0 : i32
    %c0_i32_0 = arith.constant 0 : i32
    return %arg0, %c0_i32, %arg1 : i32, i32, i32
  }
  func.func @transform_1(%arg0: i32, %arg1: i32, %arg2: i32) -> (i32, i32, i32) {
    %c0_i32 = arith.constant 0 : i32
    %c0_i32_0 = arith.constant 0 : i32
    return %arg0, %c0_i32, %arg2 : i32, i32, i32
  }
  func.func @transform_2(%arg0: i32, %arg1: i32, %arg2: i32) -> (i32, i32) {
    %c0_i32 = arith.constant 0 : i32
    %c0_i32_0 = arith.constant 0 : i32
    %c0_i32_1 = arith.constant 0 : i32
    return %c0_i32, %c0_i32_0 : i32, i32
  }
  func.func @transform_3(%arg0: i32, %arg1: i32, %arg2: i32) -> (i32, i32) {
    %c0_i32 = arith.constant 0 : i32
    %c0_i32_0 = arith.constant 0 : i32
    %c0_i32_1 = arith.constant 0 : i32
    return %c0_i32, %c0_i32_0 : i32, i32
  }
  func.func @transform_4(%arg0: i32, %arg1: i32, %arg2: i32) -> (i32, i32) {
    %c0_i32 = arith.constant 0 : i32
    %c0_i32_0 = arith.constant 0 : i32
    %c0_i32_1 = arith.constant 0 : i32
    return %c0_i32, %c0_i32_0 : i32, i32
  }
  func.func @transform_5(%arg0: i32, %arg1: i32, %arg2: i32) -> (i32, i32) {
    %c0_i32 = arith.constant 0 : i32
    %c0_i32_0 = arith.constant 0 : i32
    %c0_i32_1 = arith.constant 0 : i32
    return %c0_i32, %c0_i32_0 : i32, i32
  }
  func.func @transform_6(%arg0: i32, %arg1: i32, %arg2: i32) -> i32 {
    %c0_i32 = arith.constant 0 : i32
    %c0_i32_0 = arith.constant 0 : i32
    return %c0_i32 : i32
  }
  func.func @transform_7(%arg0: i32, %arg1: i32, %arg2: i32) -> (i32, i32, i32) {
    %c0_i32 = arith.constant 0 : i32
    %c0_i32_0 = arith.constant 0 : i32
    return %arg0, %c0_i32, %arg1 : i32, i32, i32
  }
}

</mosaic_0001>

<bundles_post_ra>
// kernel: tpu_custom_call.1
= control target key start
LH: loop header
LB: loop body
LE: loop exit
PB: predicated region body
PF: predicated region fallthrough
CT: control target
= control target key end

     0   :  { %s3072_s0 = inlined_call_operand.vmem [shape: f32[2,16,256], index: 0, kind: input, shape index: {}]   ;;  %s3073_s1 = inlined_call_operand.hbm [shape: f32[2,16,256], index: 1, kind: input, shape index: {}]   ;;  %s3074_s2 = inlined_call_operand.vmem [shape: f32[8,16], index: 2, kind: input, shape index: {}]   ;;  %s3075_s3 = inlined_call_operand.vmem [shape: f32[8,1], index: 3, kind: input, shape index: {}]   ;;  %s3076_s4 = inlined_call_operand.vmem [shape: f32[24,16], index: 4, kind: input, shape index: {}]   ;;  %s3077_s5 = inlined_call_operand.vmem [shape: f32[24,1], index: 5, kind: input, shape index: {}]   ;;  %s3078_s6 = inlined_call_operand.<no memory space> [shape: f32[1], index: 6, kind: input, shape index: {}]   ;;  %s3079_s7 = inlined_call_operand.hbm [shape: f32[2,16,256], index: 7, kind: output, shape index: {}]  }
   0x1   :  { %12 = sst [smem:[#allocation6]] %s3078_s6 }
   0x2   :  { %13 = vsyncpa [#allocation8], 0 }
   0x3   :  { %15 = vsyncpa [#allocation8 + $0x1], 0 }
   0x4   :  { %16 = vsyncpa [#allocation9], 0 }
   0x5   :  { %18 = vsyncpa [#allocation9 + $0x1], 0  ;;  %s2173_s26 = smov 0   ;;  %s2175_s27 = smov 0  }
   0x6   :  { %s2177_s28 = smov 0   ;;  %s2179_s29 = smov 0  }
   0x7   :  { %s2181_s30 = smov 0   ;;  %s2183_s8 = smov 0  }
   0x8 LB: > { %s1675_s6 = sadd.s32 4294967295, %s2118_s8   ;;  %s1676_s9 = sadd.s32 4294967294, %s2118_s8   ;;  %s2118_s8 = sphi %s2183_s8, %s24_s8   ;;  %s2114_s30 = sphi %s2181_s30, %s3305_s30   ;;  %s2110_s29 = sphi %s2179_s29, %s3304_s29   ;;  %s2106_s28 = sphi %s2177_s28, %s3303_s28   ;;  %s2102_s27 = sphi %s2175_s27, %s3302_s27   ;;  %s2098_s26 = sphi %s2173_s26, %s3301_s26  }
   0x9   : > { %s43_s10 = sadd.s32 1, %s2114_s30  ;;  %s80_s11 = sadd.s32 1, %s2106_s28 }
   0xa   : > { %p45_p0 = scmp.ge.s32.totalorder %s43_s10, 2  ;;  %p87_p1 = scmp.ne.s32.totalorder %s2106_s28, %s2102_s27 }
   0xb   : > { %p88_p2 = scmp.eq.s32.totalorder %s2118_s8, 0  ;;  %p93_p3 = scmp.ne.s32.totalorder %s2102_s27, %s2098_s26 }
   0xc   : > { %s3307_s10 = smov (%p45_p0, %s43_s10), 0  ;;  %p94_p5 = scmp.eq.s32.totalorder %s1675_s6, 0 }
   0xd   : > { %p2214_p4 = por %p88_p2, %p87_p1  ;;  %s75_s13 = ssub.s32 %s2114_s30, %s3307_s10 }
   0xe   : > { %p224_p6 = scmp.eq.s32.totalorder %s1675_s6, 1  ;;  %p78_p7 = scmp.eq.s32.totalorder %s75_s13, 0 }
   0xf   : > { %p2220_p8 = por %p94_p5, %p93_p3  ;;  %p230_p10 = scmp.eq.s32.totalorder %s1676_s9, 1 }
  0x10   : > { %p2224_p9 = por %p224_p6, %p87_p1  ;;  %p1815_p13 = scmp.lt.s32.totalorder %s2118_s8, 2 }
  0x11   : > { %s2229_s16 = scalar_select %p78_p7, %s2106_s28, %s80_s11  }
  0x12   : > { %s3144_s15 = scalar_select %p2224_p9, 1, 0 }
  0x13   : > { %p2231_p11 = por %p230_p10, %p93_p3  ;;  %s278_s18 = sand.u32 1, %s2106_s28  }
  0x14   : > { %s1679_s19 = sshll.u32 %s278_s18, 5  ;;  %s1728_s20 = sshll.u32 %s2114_s30, 9 }
  0x15   : > { %s3145_s17 = scalar_select %p2231_p11, 1, 0 }
  0x16   : > { %s2242_s23 = scalar_lea.hbm %s3073_s1, %s1728_s20  ;;  %s282_s24 = scalar_lea.vmem [#allocation7], %s1679_s19 }
  0x17   : > { %s291_s25 = sshll.u32 %s282_s24, 4  ;;  %p2248_p0 = pnand %p1815_p13, %p2214_p4  ;;  %s2244_s25 = int_to_ptr.vmem [resolvable:$true] %s291_s25 }
  0x18   : > { %s2253_s9 = scalar_lea.sflag [#allocation8], %s278_s18  ;;  %s2006_s11 = scalar_lea.hbm %s2242_s23, 512 }
  0x19   : > { %p2007_p2 = scmp.ne.s32.totalorder %s2242_s23, %s2006_s11  ;;  %p2008_p3 = pneg %p2248_p0 }
  0x1a   : > { %s2011_s12 = scalar_lea.hbm %s3073_s1, 1024  ;;  %p2012_p4 = scmp.lt.u32.totalorder %s2242_s23, %s3073_s1 }
  0x1b   : > { %p2009_p5 = pnand %p2008_p3, %p2007_p2  ;;  %p2013_p7 = scmp.lt.u32.totalorder %s2011_s12, %s2006_s11 }
  0x1c   : > { %p2015_p13 = scmp.lt.u32.totalorder %s2006_s11, %s2242_s23 }
  0x1d   : > { %p2010_p6 = pneg %p2009_p5  ;;  %p2014_p10 = por %p2013_p7, %p2012_p4 }
  0x1f   : > { %p2016_p12 = por %p2015_p13, %p2014_p10 }
  0x21   : > { %p2017_p1 = pnand %p2016_p12, %p2010_p6 }
  0x23   : > { %2020 = shalt.err (!%p2017_p1)
}
  0x24   : > { %s2021_s18 = scalar_lea.vmem %s2244_s25, 512  ;;  %s2120_s22 = smov [#allocation7]  }
  0x25   : > { %p2022_p2 = scmp.ne.s32.totalorder %s2244_s25, %s2021_s18  ;;  %s2026_s24 = sshll.u32 %s2120_s22, 4  ;;  %s2027_s24 = int_to_ptr.vmem [resolvable:$false] %s2026_s24 }
  0x26   : > { %s2028_s13 = scalar_lea.vmem %s2027_s24, 1024  ;;  %p2029_p9 = scmp.lt.s32.totalorder %s2244_s25, %s2027_s24 }
  0x27   : > { %p2024_p5 = pnand %p2022_p2, %p2008_p3  ;;  %p2030_p4 = scmp.lt.s32.totalorder %s2028_s13, %s2021_s18 }
  0x29   : > { %p2025_p11 = pneg %p2024_p5  ;;  %p2031_p7 = por %p2030_p4, %p2029_p9 }
  0x2b   : > { %p2032_p10 = pnand %p2031_p7, %p2025_p11 }
  0x2d   : > { %2035 = shalt.err (!%p2032_p10)
}
  0x2e   : > { %s2121_s11 = smov 256   ;;  %s2122_s19 = smov 16  }
  0x2f   : > { %1810 = dma.hbm_to_vmem [thread:$0]  (!%p2248_p0), %s2242_s23, 512, %s2244_s25, %s2253_s9, %s2121_s11, %s2121_s11, %s2122_s19  }
  0x30   : > { %p299_p12 = scmp.lt.s32.totalorder %s2118_s8, 3  ;;  %p3147_p1 = scmp.ge.s32.totalorder %s2118_s8, 1 }
  0x32   : > { %p300_p3 = pnand %p3147_p1, %p299_p12 }
  0x34   : > { %303 = sbr.rel (%p300_p3) target bundleno = 1111 (0x457), region = 48 }
  0x3b   : > { %s2285_s12 = sand.u32 1, %s2102_s27  }
  0x3c   : > { %s1683_s20 = sshll.u32 %s2285_s12, 5  ;;  %s306_s21 = scalar_lea.sflag [#allocation8], %s2285_s12 }
  0x3d   : > { %s309_s18 = scalar_lea.vmem [#allocation7], %s1683_s20 }
  0x3e   : > { %2089 = dma.done.wait (%p2220_p8), %s306_s21, 512  }
  0x3f   : > { %2091 = vsyncadd (%p2220_p8), %s306_s21, 4294966784  ;;  %p350_p9 = scmp.lt.s32.totalorder %s2110_s29, 1  ;;  %v2123_v0 = vmov 0.0   ;;  %v2124_v1 = vmov 0   ;;  %v467_v7 = vld [vmem:[%s309_s18 + $0x8] sm:$0xff]  ;;  %v469_v9 = vld [vmem:[%s309_s18 + $0x18] sm:$0xff] }
  0x40   : > { %444 = vmatprep.mubr.f32.mxu1 %v2123_v0  ;;  %1873 = vset.pattern.permute.xlu0 %v2124_v1  ;;  %v466_v10 = vld [vmem:[%s309_s18] sm:$0xff]  ;;  %v468_v11 = vld [vmem:[%s309_s18 + $0x10] sm:$0xff]  ;;  %v1735_v12 = vpack.c.bf16 %v469_v9, %v467_v7  ;;  %vm376_vm0 = vcmask 130048   ;;  %vm647_vm1 = vcmask 64512   ;;  %s1514_s21 = sld [smem:[#allocation6]]  ;;  %s348_s18 = scalar_lea.vmem [#allocation10], %s1683_s20 }
  0x41   : > { %s351_s23 = scalar_select %p350_p9, %s2110_s29, 1  ;;  %808 = vmatprep.mubr.f32.mxu0 %v2123_v0  ;;  %v365_v13 = vld [vmem:[%s3074_s2] sm:$0xff]  ;;  %v1737_v14 = vpack.c.bf16 %v468_v11, %v466_v10  ;;  %v471_v18 = vld [vmem:[%s3077_s5 + $0x8] sm:$0xff]  ;;  %v472_v20 = vld [vmem:[%s3077_s5 + $0x10] sm:$0xff] }
  0x42   : > { %v470_v15 = vld [vmem:[%s3077_s5] sm:$0xff]  ;;  %v464_v19 = vld [vmem:[%s3076_s4 + $0x8] sm:$0xff]  ;;  %v465_v21 = vld [vmem:[%s3076_s4 + $0x10] sm:$0xff]  ;;  %p3298_p11 = scmp.ne.s32.totalorder %s3144_s15, 0 }
  0x43   : > { %s1729_s25 = sshll.u32 %s351_s23, 5  ;;  %475 = vperm.xlu0 %1873, %v470_v15   ;;  %v370_v16 = vld [vmem:[%s3075_s3] sm:$0xff]  ;;  %s1567_s23 = sshll.u32 %s348_s18, 4  ;;  %s3018_s23 = int_to_ptr.vmem [resolvable:$true] %s1567_s23 }
  0x44   : > { %s2302_s22 = scalar_lea.vmem %s3072_s0, %s1729_s25  ;;  %v463_v17 = vld [vmem:[%s3076_s4] sm:$0xff]  ;;  %s1730_s25 = sshll.u32 %s2110_s29, 9 }
  0x45   : > { %v367_v2 = vld [vmem:[%s2302_s22 + $0x8] sm:$0xff]  ;;  %v369_v3 = vld [vmem:[%s2302_s22 + $0x18] sm:$0xff]  ;;  %v366_v4 = vld [vmem:[%s2302_s22] sm:$0xff]  ;;  %s3023_s9 = scalar_lea.hbm %s3079_s7, %s1730_s25  ;;  %s1552_s29 = scalar_lea.sflag [#allocation9], %s2285_s12 }
  0x46   : > { %v1731_v5 = vpack.c.bf16 %v369_v3, %v367_v2  ;;  %v368_v6 = vld [vmem:[%s2302_s22 + $0x10] sm:$0xff]  ;;  %s2036_s14 = scalar_lea.vmem %s3018_s23, 512 }
  0x47   : > { %v1733_v8 = vpack.c.bf16 %v368_v6, %v366_v4  ;;  %373 = vperm.xlu0 %1873, %v370_v16   ;;  %v3152_v16 = vmov 0  ;;  %p2037_p8 = scmp.ne.s32.totalorder %s3018_s23, %s2036_s14 }
  0x48   : > { %1732 = vmatprep.subr.bf16.mxu1 %v1731_v5 }
  0x49   : > { %1734 = vmatpush1.bf16.msra.mxu1 %v1733_v8  ;;  %p2038_p0 = pnand %p2037_p8, %p3298_p11 }
  0x4a   : > { %1736 = vmatprep.subr.bf16.mxu1 %v1735_v12 }
  0x4b   : > { %480 = vperm.xlu0 %1873, %v471_v18   ;;  %v2125_v18 = vmov -inf   ;;  %p2039_p6 = pneg %p2038_p0 }
  0x4c   : > { %1687 = vmatmul.mubr.msk.f32.vlgmr.msra.gmra.mrb[0].mxu1 %vm376_vm0, %v365_v13 }
  0x4d   : > { %1738 = vmatpush1.bf16.msra.mxu1 %v1737_v14  ;;  %562 = vmatprep.mubr.f32.mxu1 %v2123_v0  ;;  %v3081_v14 = vlaneseq }
  0x4f   : > { %485 = vperm.xlu0 %1873, %v472_v20   ;;  %vm2428_vm2 = vcmp.lt.s32.totalorder %v3081_v14, 256 }
  0x50   : > { %1688 = vmatmul.mubr.msk.f32.vlgmr.msra.gmra.mrb[2].mxu1 %vm376_vm0, %v463_v17  ;;  %v3153_v16 = vsel %vm2428_vm2, 4294967295, %v3152_v16  ;;  %457 = vst.msk [vmem:[#allocation3] sm:$0x3] %vm2428_vm2, %v2125_v18  ;;  %458 = vst.msk [vmem:[#allocation4] sm:$0x3] %vm2428_vm2, %v2123_v0 }
  0x51   : > { %568 = vmatprep.mubr.f32.mxu1 %v2123_v0  ;;  %3154 = vst [vmem:[#allocation17_spill] sm:$0xff] %v3153_v16 }
  0x54   : > { %1689 = vmatmul.mubr.msk.f32.gmra.mrb[4].mxu1 %vm376_vm0, %v464_v19 }
  0x55   : > { %574 = vmatprep.mubr.f32.mxu1 %v2123_v0 }
  0x58   : > { %1690 = vmatmul.mubr.msk.f32.gmra.mrb[6].mxu1 %vm376_vm0, %v465_v21 }
  0xc2   : > { %v476_v22 = vpop.permute.xlu0 %475 }
  0xc6   : > { %v374_v24 = vpop.permute.xlu0 %373 }
  0xca   : > { %v2341_v32 = vpop.permute.xlu0 %480 }
  0xcb   : > { %3149 = vst [vmem:[#allocation14_spill] sm:$0xff] %v2341_v32 }
 0x11f   : > { %v446_v23 = vpop.f32.mrb[0].mxu1 }
 0x120   : > { %v448_v25 = vpop.f32.mrb[1].mxu1  ;;  %v447_v27 = vadd.f32 %v446_v23, %v374_v24 }
 0x121   : > { %v449_v26 = vadd.f32 %v448_v25, %v374_v24 }
 0x123   : > { %v564_v28 = vpop.f32.mrb[2].mxu1  ;;  %744 = vmatprep.subr.mxu0 %v449_v26 }
 0x124   : > { %v566_v29 = vpop.f32.mrb[3].mxu1  ;;  %745 = vmatpush1.msra.mxu0 %v447_v27  ;;  %v565_v30 = vadd.f32 %v564_v28, %v476_v22 }
 0x125   : > { %v567_v37 = vadd.f32 %v566_v29, %v476_v22 }
 0x126   : > { %583 = vxpose.xlu1.b32.start.end [1/1] (short) %v565_v30, 128 }
 0x127   : > { %v2339_v31 = vpop.f32.mrb[4].mxu1 }
 0x128   : > { %3148 = vst [vmem:[#allocation13_spill] sm:$0xff] %v2339_v31  ;;  %v572_v33 = vpop.f32.mrb[5].mxu1 }
 0x129   : > { %v573_v34 = vadd.f32 %v572_v33, %v2341_v32 }
 0x12b   : > { %v2344_v35 = vpop.f32.mrb[6].mxu1  ;;  %1484 = vmatprep.mubr.f32.mxu1 %v573_v34 }
 0x12c   : > { %3150 = vst [vmem:[#allocation15_spill] sm:$0xff] %v2344_v35  ;;  %v2346_v36 = vpop.f32.mrb[7].mxu1 }
 0x12d   : > { %3151 = vst [vmem:[#allocation16_spill] sm:$0xff] %v2346_v36 }
 0x163   : > { %615 = vxpose.xlu1.b32.start.end [1/1] (short) %v567_v37, 128 }
 0x1a6   : > { %v599_v38 = vpop.trf.xlu1 }
 0x1a7   : > { %1691 = vmatmul.mubr.msk.f32.vlgmr.msra.gmra.mrb[0].mxu0 %vm647_vm1, %v599_v38 }
 0x1a8   : > { %814 = vmatprep.mubr.f32.mxu0 %v2123_v0 }
 0x1aa   : > { %v600_v39 = vpop.trf.xlu1 }
 0x1ab   : > { %1692 = vmatmul.mubr.msk.f32.gmra.mrb[2].mxu0 %vm647_vm1, %v600_v39 }
 0x1ac   : > { %820 = vmatprep.mubr.f32.mxu0 %v2123_v0 }
 0x1ae   : > { %v601_v40 = vpop.trf.xlu1 }
 0x1af   : > { %1693 = vmatmul.mubr.msk.f32.gmra.mrb[4].mxu0 %vm647_vm1, %v601_v40 }
 0x1b0   : > { %826 = vmatprep.mubr.f32.mxu0 %v2123_v0 }
 0x1b2   : > { %v602_v41 = vpop.trf.xlu1 }
 0x1b3   : > { %1694 = vmatmul.mubr.msk.f32.gmra.mrb[6].mxu0 %vm647_vm1, %v602_v41 }
 0x1b4   : > { %832 = vmatprep.mubr.f32.mxu0 %v2123_v0 }
 0x1b6   : > { %v603_v42 = vpop.trf.xlu1 }
 0x1b7   : > { %1695 = vmatmul.mubr.msk.f32.gmra.mrb[8].mxu0 %vm647_vm1, %v603_v42 }
 0x1b8   : > { %838 = vmatprep.mubr.f32.mxu0 %v2123_v0 }
 0x1ba   : > { %v604_v43 = vpop.trf.xlu1 }
 0x1bb   : > { %1696 = vmatmul.mubr.msk.f32.gmra.mrb[10].mxu0 %vm647_vm1, %v604_v43 }
 0x1bc   : > { %844 = vmatprep.mubr.f32.mxu0 %v2123_v0 }
 0x1be   : > { %v605_v44 = vpop.trf.xlu1 }
 0x1bf   : > { %1697 = vmatmul.mubr.msk.f32.gmra.mrb[12].mxu0 %vm647_vm1, %v605_v44 }
 0x1c0   : > { %850 = vmatprep.mubr.f32.mxu0 %v2123_v0 }
 0x1c2   : > { %v606_v45 = vpop.trf.xlu1 }
 0x1c3   : > { %1698 = vmatmul.mubr.msk.f32.gmra.mrb[14].mxu0 %vm647_vm1, %v606_v45 }
 0x1c4   : > { %856 = vmatprep.mubr.f32.mxu0 %v2123_v0 }
 0x1c6   : > { %v607_v46 = vpop.trf.xlu1 }
 0x1c7   : > { %1699 = vmatmul.mubr.msk.f32.gmra.mrb[16].mxu0 %vm647_vm1, %v607_v46 }
 0x1c8   : > { %862 = vmatprep.mubr.f32.mxu0 %v2123_v0 }
 0x1ca   : > { %v608_v47 = vpop.trf.xlu1 }
 0x1cb   : > { %1700 = vmatmul.mubr.msk.f32.gmra.mrb[18].mxu0 %vm647_vm1, %v608_v47 }
 0x1cc   : > { %868 = vmatprep.mubr.f32.mxu0 %v2123_v0 }
 0x1ce   : > { %v609_v48 = vpop.trf.xlu1 }
 0x1cf   : > { %1701 = vmatmul.mubr.msk.f32.gmra.mrb[20].mxu0 %vm647_vm1, %v609_v48 }
 0x1d0   : > { %874 = vmatprep.mubr.f32.mxu0 %v2123_v0 }
 0x1d2   : > { %v610_v49 = vpop.trf.xlu1 }
 0x1d3   : > { %1702 = vmatmul.mubr.msk.f32.gmra.mrb[22].mxu0 %vm647_vm1, %v610_v49 }
 0x1d4   : > { %880 = vmatprep.mubr.f32.mxu0 %v2123_v0 }
 0x1d6   : > { %v611_v50 = vpop.trf.xlu1 }
 0x1d7   : > { %1703 = vmatmul.mubr.msk.f32.gmra.mrb[24].mxu0 %vm647_vm1, %v611_v50 }
 0x1d8   : > { %886 = vmatprep.mubr.f32.mxu0 %v2123_v0 }
 0x1da   : > { %v612_v51 = vpop.trf.xlu1 }
 0x1db   : > { %1704 = vmatmul.mubr.msk.f32.gmra.mrb[26].mxu0 %vm647_vm1, %v612_v51 }
 0x1dc   : > { %892 = vmatprep.mubr.f32.mxu0 %v2123_v0 }
 0x1de   : > { %v613_v52 = vpop.trf.xlu1 }
 0x1df   : > { %1705 = vmatmul.mubr.msk.f32.gmra.mrb[28].mxu0 %vm647_vm1, %v613_v52 }
 0x1e0   : > { %898 = vmatprep.mubr.f32.mxu0 %v2123_v0 }
 0x1e2   : > { %v614_v53 = vpop.trf.xlu1 }
 0x1e3   : > { %1706 = vmatmul.mubr.msk.f32.gmra.mrb[30].mxu0 %vm647_vm1, %v614_v53 }
 0x1e4   : > { %904 = vmatprep.mubr.f32.mxu0 %v2123_v0 }
 0x1e6   : > { %v631_v54 = vpop.trf.xlu1 }
 0x1e7   : > { %1707 = vmatmul.mubr.msk.f32.gmra.mrb[32].mxu0 %vm647_vm1, %v631_v54 }
 0x1e8   : > { %910 = vmatprep.mubr.f32.mxu0 %v2123_v0 }
 0x1ea   : > { %v632_v55 = vpop.trf.xlu1 }
 0x1eb   : > { %1708 = vmatmul.mubr.msk.f32.gmra.mrb[34].mxu0 %vm647_vm1, %v632_v55 }
 0x1ec   : > { %916 = vmatprep.mubr.f32.mxu0 %v2123_v0 }
 0x1ee   : > { %v633_v56 = vpop.trf.xlu1 }
 0x1ef   : > { %1709 = vmatmul.mubr.msk.f32.gmra.mrb[36].mxu0 %vm647_vm1, %v633_v56 }
 0x1f0   : > { %922 = vmatprep.mubr.f32.mxu0 %v2123_v0 }
 0x1f2   : > { %v634_v57 = vpop.trf.xlu1 }
 0x1f3   : > { %1710 = vmatmul.mubr.msk.f32.gmra.mrb[38].mxu0 %vm647_vm1, %v634_v57 }
 0x1f4   : > { %928 = vmatprep.mubr.f32.mxu0 %v2123_v0 }
 0x1f6   : > { %v635_v58 = vpop.trf.xlu1 }
 0x1f7   : > { %1711 = vmatmul.mubr.msk.f32.gmra.mrb[40].mxu0 %vm647_vm1, %v635_v58 }
 0x1f8   : > { %934 = vmatprep.mubr.f32.mxu0 %v2123_v0 }
 0x1fa   : > { %v636_v59 = vpop.trf.xlu1 }
 0x1fb   : > { %1712 = vmatmul.mubr.msk.f32.gmra.mrb[42].mxu0 %vm647_vm1, %v636_v59 }
 0x1fc   : > { %940 = vmatprep.mubr.f32.mxu0 %v2123_v0 }
 0x1fe   : > { %v637_v60 = vpop.trf.xlu1 }
 0x1ff   : > { %1713 = vmatmul.mubr.msk.f32.gmra.mrb[44].mxu0 %vm647_vm1, %v637_v60 }
 0x200   : > { %946 = vmatprep.mubr.f32.mxu0 %v2123_v0 }
 0x202   : > { %v638_v61 = vpop.trf.xlu1 }
 0x203   : > { %1714 = vmatmul.mubr.msk.f32.gmra.mrb[46].mxu0 %vm647_vm1, %v638_v61 }
 0x204   : > { %952 = vmatprep.mubr.f32.mxu0 %v2123_v0 }
 0x206   : > { %v639_v62 = vpop.trf.xlu1 }
 0x207   : > { %1715 = vmatmul.mubr.msk.f32.gmra.mrb[48].mxu0 %vm647_vm1, %v639_v62 }
 0x208   : > { %958 = vmatprep.mubr.f32.mxu0 %v2123_v0 }
 0x20a   : > { %v640_v63 = vpop.trf.xlu1 }
 0x20b   : > { %1716 = vmatmul.mubr.msk.f32.gmra.mrb[50].mxu0 %vm647_vm1, %v640_v63 }
 0x20c   : > { %964 = vmatprep.mubr.f32.mxu0 %v2123_v0 }
 0x20e   : > { %v641_v1 = vpop.trf.xlu1 }
 0x20f   : > { %1717 = vmatmul.mubr.msk.f32.gmra.mrb[52].mxu0 %vm647_vm1, %v641_v1 }
 0x210   : > { %970 = vmatprep.mubr.f32.mxu0 %v2123_v0 }
 0x212   : > { %v642_v2 = vpop.trf.xlu1 }
 0x213   : > { %1718 = vmatmul.mubr.msk.f32.gmra.mrb[54].mxu0 %vm647_vm1, %v642_v2 }
 0x214   : > { %976 = vmatprep.mubr.f32.mxu0 %v2123_v0 }
 0x216   : > { %v643_v3 = vpop.trf.xlu1 }
 0x217   : > { %1719 = vmatmul.mubr.msk.f32.gmra.mrb[56].mxu0 %vm647_vm1, %v643_v3 }
 0x218   : > { %982 = vmatprep.mubr.f32.mxu0 %v2123_v0 }
 0x21a   : > { %v644_v4 = vpop.trf.xlu1 }
 0x21b   : > { %1720 = vmatmul.mubr.msk.f32.gmra.mrb[58].mxu0 %vm647_vm1, %v644_v4 }
 0x21c   : > { %988 = vmatprep.mubr.f32.mxu0 %v2123_v0 }
 0x21e   : > { %v645_v5 = vpop.trf.xlu1 }
 0x21f   : > { %1721 = vmatmul.mubr.msk.f32.gmra.mrb[60].mxu0 %vm647_vm1, %v645_v5 }
 0x220   : > { %994 = vmatprep.mubr.f32.mxu0 %v2123_v0 }
 0x222   : > { %v646_v6 = vpop.trf.xlu1 }
 0x223   : > { %1722 = vmatmul.mubr.msk.f32.gmra.mrb[62].mxu0 %vm647_vm1, %v646_v6 }
 0x27a   : > { %v2411_v7 = vpop.f32.mrb[0].mxu0 }
 0x27b   : > { %v2413_v8 = vpop.f32.mrb[1].mxu0 }
 0x27e   : > { %v2415_v9 = vpop.f32.mrb[2].mxu0 }
 0x27f   : > { %v2417_v10 = vpop.f32.mrb[3].mxu0 }
 0x282   : > { %v2419_v11 = vpop.f32.mrb[4].mxu0 }
 0x283   : > { %v1002_v12 = vmax.f32 %v2411_v7, %v2419_v11  ;;  %v2423_v13 = vpop.f32.mrb[5].mxu0 }
 0x284   : > { %v1039_v15 = vmax.f32 %v2413_v8, %v2423_v13 }
 0x286   : > { %v2432_v17 = vpop.f32.mrb[6].mxu0 }
 0x287   : > { %v1003_v19 = vmax.f32 %v2415_v9, %v2432_v17  ;;  %v2441_v20 = vpop.f32.mrb[7].mxu0 }
 0x288   : > { %v1040_v21 = vmax.f32 %v2417_v10, %v2441_v20 }
 0x28a   : > { %v2445_v22 = vpop.f32.mrb[8].mxu0 }
 0x28b   : > { %v1004_v23 = vmax.f32 %v1002_v12, %v2445_v22  ;;  %v2448_v24 = vpop.f32.mrb[9].mxu0 }
 0x28c   : > { %v1041_v25 = vmax.f32 %v1039_v15, %v2448_v24 }
 0x28e   : > { %v2451_v26 = vpop.f32.mrb[10].mxu0 }
 0x28f   : > { %v1005_v0 = vmax.f32 %v1003_v19, %v2451_v26  ;;  %v2454_v27 = vpop.f32.mrb[11].mxu0 }
 0x290   : > { %v1042_v28 = vmax.f32 %v1040_v21, %v2454_v27 }
 0x292   : > { %v2457_v29 = vpop.f32.mrb[12].mxu0 }
 0x293   : > { %v1006_v30 = vmax.f32 %v1004_v23, %v2457_v29  ;;  %v2460_v33 = vpop.f32.mrb[13].mxu0 }
 0x294   : > { %v1043_v34 = vmax.f32 %v1041_v25, %v2460_v33 }
 0x296   : > { %v2463_v37 = vpop.f32.mrb[14].mxu0 }
 0x297   : > { %v1007_v38 = vmax.f32 %v1005_v0, %v2463_v37  ;;  %v2466_v39 = vpop.f32.mrb[15].mxu0 }
 0x298   : > { %v1044_v40 = vmax.f32 %v1042_v28, %v2466_v39 }
 0x29a   : > { %v2469_v41 = vpop.f32.mrb[16].mxu0 }
 0x29b   : > { %v1008_v42 = vmax.f32 %v1006_v30, %v2469_v41  ;;  %v2472_v43 = vpop.f32.mrb[17].mxu0 }
 0x29c   : > { %v1045_v44 = vmax.f32 %v1043_v34, %v2472_v43 }
 0x29e   : > { %v2475_v45 = vpop.f32.mrb[18].mxu0 }
 0x29f   : > { %v1009_v46 = vmax.f32 %v1007_v38, %v2475_v45  ;;  %v2478_v47 = vpop.f32.mrb[19].mxu0 }
 0x2a0   : > { %v1046_v48 = vmax.f32 %v1044_v40, %v2478_v47 }
 0x2a2   : > { %v2481_v49 = vpop.f32.mrb[20].mxu0 }
 0x2a3   : > { %v1010_v50 = vmax.f32 %v1008_v42, %v2481_v49  ;;  %v2484_v51 = vpop.f32.mrb[21].mxu0 }
 0x2a4   : > { %v1047_v52 = vmax.f32 %v1045_v44, %v2484_v51 }
 0x2a6   : > { %v2487_v53 = vpop.f32.mrb[22].mxu0 }
 0x2a7   : > { %v1011_v54 = vmax.f32 %v1009_v46, %v2487_v53  ;;  %v2490_v55 = vpop.f32.mrb[23].mxu0 }
 0x2a8   : > { %v1048_v56 = vmax.f32 %v1046_v48, %v2490_v55 }
 0x2aa   : > { %v2493_v57 = vpop.f32.mrb[24].mxu0 }
 0x2ab   : > { %v1012_v58 = vmax.f32 %v1010_v50, %v2493_v57  ;;  %v2496_v59 = vpop.f32.mrb[25].mxu0 }
 0x2ac   : > { %v1049_v60 = vmax.f32 %v1047_v52, %v2496_v59 }
 0x2ae   : > { %v2499_v61 = vpop.f32.mrb[26].mxu0 }
 0x2af   : > { %v1013_v62 = vmax.f32 %v1011_v54, %v2499_v61  ;;  %v2502_v63 = vpop.f32.mrb[27].mxu0 }
 0x2b0   : > { %v1050_v1 = vmax.f32 %v1048_v56, %v2502_v63 }
 0x2b2   : > { %v2505_v2 = vpop.f32.mrb[28].mxu0 }
 0x2b3   : > { %v1014_v3 = vmax.f32 %v1012_v58, %v2505_v2  ;;  %v2508_v4 = vpop.f32.mrb[29].mxu0 }
 0x2b4   : > { %v1051_v5 = vmax.f32 %v1049_v60, %v2508_v4 }
 0x2b6   : > { %v2511_v6 = vpop.f32.mrb[30].mxu0 }
 0x2b7   : > { %v1015_v12 = vmax.f32 %v1013_v62, %v2511_v6  ;;  %v2514_v15 = vpop.f32.mrb[31].mxu0 }
 0x2b8   : > { %v1052_v18 = vmax.f32 %v1050_v1, %v2514_v15 }
 0x2ba   : > { %v2517_v19 = vpop.f32.mrb[32].mxu0 }
 0x2bb   : > { %v1016_v21 = vmax.f32 %v1014_v3, %v2517_v19  ;;  %v2520_v23 = vpop.f32.mrb[33].mxu0 }
 0x2bc   : > { %v1053_v25 = vmax.f32 %v1051_v5, %v2520_v23 }
 0x2be   : > { %v2523_v0 = vpop.f32.mrb[34].mxu0 }
 0x2bf   : > { %v1017_v28 = vmax.f32 %v1015_v12, %v2523_v0  ;;  %v2526_v30 = vpop.f32.mrb[35].mxu0 }
 0x2c0   : > { %v1054_v34 = vmax.f32 %v1052_v18, %v2526_v30 }
 0x2c2   : > { %v2529_v38 = vpop.f32.mrb[36].mxu0 }
 0x2c3   : > { %v1018_v40 = vmax.f32 %v1016_v21, %v2529_v38  ;;  %v2532_v42 = vpop.f32.mrb[37].mxu0 }
 0x2c4   : > { %v1055_v44 = vmax.f32 %v1053_v25, %v2532_v42 }
 0x2c6   : > { %v2535_v46 = vpop.f32.mrb[38].mxu0 }
 0x2c7   : > { %3155 = vst [vmem:[#allocation18_spill] sm:$0xff] %v2535_v46  ;;  %v1019_v48 = vmax.f32 %v1017_v28, %v2535_v46  ;;  %v2538_v50 = vpop.f32.mrb[39].mxu0 }
 0x2c8   : > { %3156 = vst [vmem:[#allocation19_spill] sm:$0xff] %v2538_v50  ;;  %v1056_v52 = vmax.f32 %v1054_v34, %v2538_v50 }
 0x2ca   : > { %v2541_v54 = vpop.f32.mrb[40].mxu0 }
 0x2cb   : > { %3157 = vst [vmem:[#allocation20_spill] sm:$0xff] %v2541_v54  ;;  %v1020_v56 = vmax.f32 %v1018_v40, %v2541_v54  ;;  %v2544_v58 = vpop.f32.mrb[41].mxu0 }
 0x2cc   : > { %3158 = vst [vmem:[#allocation21_spill] sm:$0xff] %v2544_v58  ;;  %v1057_v60 = vmax.f32 %v1055_v44, %v2544_v58  ;;  %v3180_v58 = vlaneseq }
 0x2ce   : > { %v2547_v62 = vpop.f32.mrb[42].mxu0  ;;  %v1083_v54 = vshrl.u32 %v3180_v58, 7 }
 0x2cf   : > { %3159 = vst [vmem:[#allocation22_spill] sm:$0xff] %v2547_v62  ;;  %v1021_v1 = vmax.f32 %v1019_v48, %v2547_v62  ;;  %v2550_v3 = vpop.f32.mrb[43].mxu0 }
 0x2d0   : > { %3160 = vst [vmem:[#allocation23_spill] sm:$0xff] %v2550_v3  ;;  %v1058_v5 = vmax.f32 %v1056_v52, %v2550_v3 }
 0x2d2   : > { %v2553_v12 = vpop.f32.mrb[44].mxu0 }
 0x2d3   : > { %3161 = vst [vmem:[#allocation24_spill] sm:$0xff] %v2553_v12  ;;  %v1022_v18 = vmax.f32 %v1020_v56, %v2553_v12  ;;  %v2556_v21 = vpop.f32.mrb[45].mxu0  ;;  %v2126_v12 = vmov 1966171168  }
 0x2d4   : > { %3162 = vst [vmem:[#allocation25_spill] sm:$0xff] %v2556_v21  ;;  %v1059_v25 = vmax.f32 %v1057_v60, %v2556_v21 }
 0x2d6   : > { %v2559_v28 = vpop.f32.mrb[46].mxu0 }
 0x2d7   : > { %3163 = vst [vmem:[#allocation26_spill] sm:$0xff] %v2559_v28  ;;  %v1023_v34 = vmax.f32 %v1021_v1, %v2559_v28  ;;  %v2562_v40 = vpop.f32.mrb[47].mxu0 }
 0x2d8   : > { %3164 = vst [vmem:[#allocation27_spill] sm:$0xff] %v2562_v40  ;;  %v1060_v44 = vmax.f32 %v1058_v5, %v2562_v40 }
 0x2da   : > { %v2565_v48 = vpop.f32.mrb[48].mxu0  ;;  %v3192_v58 = vld [vmem:[#allocation24_spill] sm:$0xff] }
 0x2db   : > { %3165 = vst [vmem:[#allocation28_spill] sm:$0xff] %v2565_v48  ;;  %v1024_v52 = vmax.f32 %v1022_v18, %v2565_v48  ;;  %v2568_v14 = vpop.f32.mrb[49].mxu0 }
 0x2dc   : > { %3166 = vst [vmem:[#allocation29_spill] sm:$0xff] %v2568_v14  ;;  %v1061_v56 = vmax.f32 %v1059_v25, %v2568_v14 }
 0x2de   : > { %v2571_v35 = vpop.f32.mrb[50].mxu0 }
 0x2df   : > { %3167 = vst [vmem:[#allocation30_spill] sm:$0xff] %v2571_v35  ;;  %v1025_v60 = vmax.f32 %v1023_v34, %v2571_v35  ;;  %v2574_v36 = vpop.f32.mrb[51].mxu0 }
 0x2e0   : > { %3168 = vst [vmem:[#allocation31_spill] sm:$0xff] %v2574_v36  ;;  %v1062_v1 = vmax.f32 %v1060_v44, %v2574_v36 }
 0x2e2   : > { %v2577_v31 = vpop.f32.mrb[52].mxu0 }
 0x2e3   : > { %3169 = vst [vmem:[#allocation32_spill] sm:$0xff] %v2577_v31  ;;  %v1026_v5 = vmax.f32 %v1024_v52, %v2577_v31  ;;  %v2580_v32 = vpop.f32.mrb[53].mxu0 }
 0x2e4   : > { %3170 = vst [vmem:[#allocation33_spill] sm:$0xff] %v2580_v32  ;;  %v1063_v18 = vmax.f32 %v1061_v56, %v2580_v32 }
 0x2e6   : > { %v2583_v48 = vpop.f32.mrb[54].mxu0 }
 0x2e7   : > { %3171 = vst [vmem:[#allocation34_spill] sm:$0xff] %v2583_v48  ;;  %v1027_v25 = vmax.f32 %v1025_v60, %v2583_v48  ;;  %v2586_v14 = vpop.f32.mrb[55].mxu0 }
 0x2e8   : > { %3172 = vst [vmem:[#allocation35_spill] sm:$0xff] %v2586_v14  ;;  %v1064_v34 = vmax.f32 %v1062_v1, %v2586_v14 }
 0x2ea   : > { %v2589_v35 = vpop.f32.mrb[56].mxu0 }
 0x2eb   : > { %3173 = vst [vmem:[#allocation36_spill] sm:$0xff] %v2589_v35  ;;  %v1028_v44 = vmax.f32 %v1026_v5, %v2589_v35  ;;  %v2592_v36 = vpop.f32.mrb[57].mxu0 }
 0x2ec   : > { %3174 = vst [vmem:[#allocation37_spill] sm:$0xff] %v2592_v36  ;;  %v1065_v52 = vmax.f32 %v1063_v18, %v2592_v36 }
 0x2ee   : > { %v2595_v31 = vpop.f32.mrb[58].mxu0 }
 0x2ef   : > { %3175 = vst [vmem:[#allocation38_spill] sm:$0xff] %v2595_v31  ;;  %v1029_v56 = vmax.f32 %v1027_v25, %v2595_v31  ;;  %v2598_v32 = vpop.f32.mrb[59].mxu0 }
 0x2f0   : > { %3176 = vst [vmem:[#allocation39_spill] sm:$0xff] %v2598_v32  ;;  %v1066_v60 = vmax.f32 %v1064_v34, %v2598_v32 }
 0x2f2   : > { %v2601_v48 = vpop.f32.mrb[60].mxu0 }
 0x2f3   : > { %3177 = vst [vmem:[#allocation40_spill] sm:$0xff] %v2601_v48  ;;  %v1030_v1 = vmax.f32 %v1028_v44, %v2601_v48  ;;  %v2604_v14 = vpop.f32.mrb[61].mxu0  ;;  %v1080_v44 = vunpack.c.l.s4 %v2126_v12 }
 0x2f4   : > { %3178 = vst [vmem:[#allocation41_spill] sm:$0xff] %v2604_v14  ;;  %v1067_v5 = vmax.f32 %v1065_v52, %v2604_v14 }
 0x2f5   : > { %v1081_v14 = vunpack.c.0.s8 %v1080_v44  ;;  %v3186_v44 = vld [vmem:[#allocation18_spill] sm:$0xff] }
 0x2f6   : > { %v2607_v35 = vpop.f32.mrb[62].mxu0 }
 0x2f7   : > { %3179 = vst [vmem:[#allocation42_spill] sm:$0xff] %v2607_v35  ;;  %v1031_v18 = vmax.f32 %v1029_v56, %v2607_v35  ;;  %v2610_v36 = vpop.f32.mrb[63].mxu0 }
 0x2f8   : > { %v1068_v25 = vmax.f32 %v1066_v60, %v2610_v36  ;;  %v2614_v60 = vsub.s32 %v1081_v14, %v1083_v54 }
 0x2f9   : > { %v1032_v31 = vmax.f32 %v1030_v1, %v1031_v18 }
 0x2fa   : > { %v1069_v40 = vmax.f32 %v1067_v5, %v1068_v25  ;;  %3181 = vst [vmem:[#allocation43_spill] sm:$0xff] %v2614_v60  ;;  %v3194_v25 = vld [vmem:[#allocation26_spill] sm:$0xff] }
 0x2fb   : > { %v1033_v28 = vrot.slane %v1032_v31, 4 }
 0x2fc   : > { %v1070_v34 = vrot.slane %v1069_v40, 4 }
 0x2fd   : > { %v1034_v32 = vmax.f32 %v1032_v31, %v1033_v28  ;;  %v2617_v31 = vld [vmem:[#allocation3] sm:$0x3]  ;;  %v2620_v28 = vsub.s32 0, %v1083_v54 }
 0x2fe   : > { %v1071_v21 = vmax.f32 %v1069_v40, %v1070_v34  ;;  %3182 = vst [vmem:[#allocation44_spill] sm:$0xff] %v2617_v31  ;;  %v3193_v34 = vld [vmem:[#allocation25_spill] sm:$0xff] }
 0x2ff   : > { %v1035_v48 = vrot.slane %v1034_v32, 2  ;;  %3183 = vst [vmem:[#allocation45_spill] sm:$0xff] %v2620_v28 }
 0x300   : > { %v1072_v3 = vrot.slane %v1071_v21, 2 }
 0x301   : > { %v1036_v62 = vmax.f32 %v1034_v32, %v1035_v48  ;;  %v2622_v32 = vsub.s32 1, %v1083_v54  ;;  %v3210_v48 = vld [vmem:[#allocation42_spill] sm:$0xff] }
 0x302   : > { %v1073_v52 = vmax.f32 %v1071_v21, %v1072_v3 }
 0x303   : > { %v1037_v56 = vrot.slane %v1036_v62, 1  ;;  %3184 = vst [vmem:[#allocation46_spill] sm:$0xff] %v2622_v32 }
 0x304   : > { %v1074_v35 = vrot.slane %v1073_v52, 1 }
 0x305   : > { %v1038_v50 = vmax.f32 %v1036_v62, %v1037_v56  ;;  %v3188_v56 = vld [vmem:[#allocation20_spill] sm:$0xff] }
 0x306   : > { %v1075_v46 = vmax.f32 %v1073_v52, %v1074_v35  ;;  %v3187_v52 = vld [vmem:[#allocation19_spill] sm:$0xff] }
 0x308   : > { %v1078_v1 = vcombine.low %v1038_v50, %v1075_v46 }
 0x30a   : > { %v1085_v5 = vrot.slane %v1078_v1, %v2614_v60  ;;  %v3189_v1 = vld [vmem:[#allocation21_spill] sm:$0xff] }
 0x30c   : > { %v1092_v12 = vrot.slane %v1085_v5, %v2614_v60  ;;  %v3190_v5 = vld [vmem:[#allocation22_spill] sm:$0xff] }
 0x30d   : > { %v3206_v60 = vld [vmem:[#allocation38_spill] sm:$0xff] }
 0x30e   : > { %v2625_v3 = vmax.f32 %v2617_v31, %v1092_v12  ;;  %v3191_v12 = vld [vmem:[#allocation23_spill] sm:$0xff] }
 0x310   : > { %3185 = vst [vmem:[#allocation47_spill] sm:$0xff] %v2625_v3  ;;  %v2631_v35 = vrot.slane %v2625_v3, %v2620_v28  ;;  %v2635_v14 = vrot.slane %v2625_v3, %v2622_v32  ;;  %1505 = vst.msk [vmem:[#allocation3] sm:$0x3] %vm2428_vm2, %v2625_v3  ;;  %v3204_v28 = vld [vmem:[#allocation36_spill] sm:$0xff]  ;;  %v3207_v3 = vld [vmem:[#allocation39_spill] sm:$0xff] }
 0x312   : > { %v3211_v21 = vsub.f32 %v2411_v7, %v2631_v35  ;;  %v3212_v62 = vsub.f32 %v2413_v8, %v2635_v14  ;;  %v3213_v50 = vsub.f32 %v2415_v9, %v2631_v35  ;;  %v3214_v46 = vsub.f32 %v2417_v10, %v2635_v14 }
 0x313   : > { %v3215_v40 = vsub.f32 %v2419_v11, %v2631_v35  ;;  %v3216_v7 = vsub.f32 %v2423_v13, %v2635_v14  ;;  %v3217_v8 = vsub.f32 %v2432_v17, %v2631_v35  ;;  %v3218_v10 = vsub.f32 %v2441_v20, %v2635_v14 }
 0x314   : > { %v1173_v16 = vmul.f32 1.442695, %v3211_v21  ;;  %v1175_v54 = vmul.f32 1.442695, %v3212_v62  ;;  %v1177_v31 = vmul.f32 1.442695, %v3213_v50  ;;  %v3219_v11 = vsub.f32 %v2445_v22, %v2631_v35 }
 0x315   : > { %v1179_v18 = vmul.f32 1.442695, %v3214_v46  ;;  %v1181_v32 = vmul.f32 1.442695, %v3215_v40  ;;  %v1183_v21 = vmul.f32 1.442695, %v3216_v7  ;;  %v3220_v13 = vsub.f32 %v2448_v24, %v2635_v14 }
 0x316   : > { %1874 = vpow2.f32 %v1173_v16  ;;  %v1185_v9 = vmul.f32 1.442695, %v3217_v8  ;;  %v1187_v46 = vmul.f32 1.442695, %v3218_v10  ;;  %v1189_v16 = vmul.f32 1.442695, %v3219_v11 }
 0x317   : > { %1876 = vpow2.f32 %v1175_v54  ;;  %v1191_v50 = vmul.f32 1.442695, %v3220_v13  ;;  %v3221_v17 = vsub.f32 %v2451_v26, %v2631_v35  ;;  %v3222_v20 = vsub.f32 %v2454_v27, %v2635_v14 }
 0x318   : > { %1878 = vpow2.f32 %v1177_v31  ;;  %v3223_v22 = vsub.f32 %v2457_v29, %v2631_v35  ;;  %v3224_v24 = vsub.f32 %v2460_v33, %v2635_v14  ;;  %v3225_v26 = vsub.f32 %v2463_v37, %v2631_v35 }
 0x319   : > { %1880 = vpow2.f32 %v1179_v18  ;;  %v1193_v31 = vmul.f32 1.442695, %v3221_v17  ;;  %v1195_v54 = vmul.f32 1.442695, %v3222_v20  ;;  %v3226_v27 = vsub.f32 %v2466_v39, %v2635_v14 }
 0x31a   : > { %1882 = vpow2.f32 %v1181_v32  ;;  %v1197_v32 = vmul.f32 1.442695, %v3223_v22  ;;  %v1199_v62 = vmul.f32 1.442695, %v3224_v24  ;;  %v1201_v18 = vmul.f32 1.442695, %v3225_v26 }
 0x31b   : > { %1884 = vpow2.f32 %v1183_v21  ;;  %v1203_v21 = vmul.f32 1.442695, %v3226_v27  ;;  %v3227_v29 = vsub.f32 %v2469_v41, %v2631_v35  ;;  %v3228_v10 = vsub.f32 %v2472_v43, %v2635_v14 }
 0x31c   : > { %1886 = vpow2.f32 %v1185_v9  ;;  %v3229_v11 = vsub.f32 %v2475_v45, %v2631_v35  ;;  %v3230_v13 = vsub.f32 %v2478_v47, %v2635_v14  ;;  %v3231_v17 = vsub.f32 %v2481_v49, %v2631_v35 }
 0x31d   : > { %1888 = vpow2.f32 %v1187_v46  ;;  %v1205_v9 = vmul.f32 1.442695, %v3227_v29  ;;  %v1207_v46 = vmul.f32 1.442695, %v3228_v10  ;;  %v3232_v20 = vsub.f32 %v2484_v51, %v2635_v14 }
 0x31e   : > { %1890 = vpow2.f32 %v1189_v16  ;;  %v1209_v16 = vmul.f32 1.442695, %v3229_v11  ;;  %v3233_v22 = vsub.f32 %v2487_v53, %v2631_v35  ;;  %v3235_v49 = vsub.f32 %v2493_v57, %v2631_v35 }
 0x31f   : > { %1892 = vpow2.f32 %v1191_v50  ;;  %v1211_v50 = vmul.f32 1.442695, %v3230_v13  ;;  %v3236_v51 = vsub.f32 %v2496_v59, %v2635_v14  ;;  %v3237_v27 = vsub.f32 %v2499_v61, %v2631_v35 }
 0x320   : > { %v1875_v40 = vpop.eup %1874  ;;  %1894 = vpow2.f32 %v1193_v31  ;;  %v1213_v31 = vmul.f32 1.442695, %v3231_v17  ;;  %v1217_v47 = vmul.f32 1.442695, %v3233_v22 }
 0x321   : > { %v1877_v7 = vpop.eup %1876  ;;  %1896 = vpow2.f32 %v1195_v54  ;;  %v1215_v54 = vmul.f32 1.442695, %v3232_v20 }
 0x322   : > { %v1879_v8 = vpop.eup %1878  ;;  %1898 = vpow2.f32 %v1197_v32  ;;  %v3234_v32 = vsub.f32 %v2490_v55, %v2635_v14 }
 0x323   : > { %v1881_v33 = vpop.eup %1880  ;;  %1900 = vpow2.f32 %v1199_v62  ;;  %v1221_v62 = vmul.f32 1.442695, %v3235_v49  ;;  %v1303_v53 = vadd.f32 %v1879_v8, %v1875_v40  ;;  %v1741_v10 = vpack.c.bf16 %v1879_v8, %v1875_v40 }
 0x324   : > { %v1883_v37 = vpop.eup %1882  ;;  %1902 = vpow2.f32 %v1201_v18  ;;  %v1219_v24 = vmul.f32 1.442695, %v3234_v32  ;;  %v1223_v18 = vmul.f32 1.442695, %v3236_v51  ;;  %v1739_v55 = vpack.c.bf16 %v1881_v33, %v1877_v7 }
 0x325   : > { %v1885_v39 = vpop.eup %1884  ;;  %1904 = vpow2.f32 %v1203_v21  ;;  %v1225_v21 = vmul.f32 1.442695, %v3237_v27  ;;  %v1304_v57 = vadd.f32 %v1883_v37, %v1303_v53  ;;  %v3241_v32 = vsub.f32 %v2511_v6, %v2631_v35 }
 0x326   : > { %v1887_v41 = vpop.eup %1886  ;;  %1906 = vpow2.f32 %v1205_v9  ;;  %v1340_v9 = vadd.f32 %v1881_v33, %v1877_v7  ;;  %1740 = vmatprep.subr.bf16.mxu1 %v1739_v55  ;;  %v3239_v33 = vsub.f32 %v2505_v2, %v2631_v35  ;;  %v3245_v55 = vsub.f32 %v2523_v0, %v2631_v35 }
 0x327   : > { %v1889_v43 = vpop.eup %1888  ;;  %1908 = vpow2.f32 %v1207_v46  ;;  %v1305_v40 = vadd.f32 %v1887_v41, %v1304_v57  ;;  %1742 = vmatpush1.bf16.msra.mxu1 %v1741_v10  ;;  %v1233_v2 = vmul.f32 1.442695, %v3241_v32 }
 0x328   : > { %v2834_v45 = vpop.eup %1890  ;;  %1910 = vpow2.f32 %v1209_v16  ;;  %v1743_v11 = vpack.c.bf16 %v1889_v43, %v1885_v39  ;;  %v1745_v16 = vpack.c.bf16 %v1887_v41, %v1883_v37  ;;  %v1341_v59 = vadd.f32 %v1885_v39, %v1340_v9 }
 0x329   : > { %v1893_v26 = vpop.eup %1892  ;;  %1912 = vpow2.f32 %v1211_v50  ;;  %v1229_v37 = vmul.f32 1.442695, %v3239_v33 }
 0x32a   : > { %v1895_v29 = vpop.eup %1894  ;;  %1914 = vpow2.f32 %v1213_v31  ;;  %v3238_v31 = vsub.f32 %v2502_v63, %v2635_v14  ;;  %v1342_v20 = vadd.f32 %v1889_v43, %v1341_v59  ;;  %1744 = vmatprep.subr.bf16.mxu1 %v1743_v11  ;;  %v3246_v11 = vsub.f32 %v2526_v30, %v2635_v14 }
 0x32b   : > { %v1897_v46 = vpop.eup %1896  ;;  %1916 = vpow2.f32 %v1215_v54  ;;  %v1749_v61 = vpack.c.bf16 %v1895_v29, %v2834_v45  ;;  %v3240_v54 = vsub.f32 %v2508_v4, %v2635_v14  ;;  %1746 = vmatpush1.bf16.msra.mxu1 %v1745_v16  ;;  %v3247_v59 = vsub.f32 %v2529_v38, %v2631_v35 }
 0x32c   : > { %v2851_v13 = vpop.eup %1898  ;;  %1918 = vpow2.f32 %v1217_v47  ;;  %v1747_v50 = vpack.c.bf16 %v1897_v46, %v1893_v26  ;;  %v1227_v7 = vmul.f32 1.442695, %v3238_v31  ;;  %v1306_v47 = vadd.f32 %v2834_v45, %v1305_v40 }
 0x32d   : > { %v1901_v17 = vpop.eup %1900  ;;  %1920 = vpow2.f32 %v1219_v24  ;;  %v1231_v22 = vmul.f32 1.442695, %v3240_v54  ;;  %v1343_v24 = vadd.f32 %v1893_v26, %v1342_v20  ;;  %v3244_v26 = vsub.f32 %v2520_v23, %v2635_v14 }
 0x32e   : > { %v1903_v8 = vpop.eup %1902  ;;  %1922 = vpow2.f32 %v1221_v62  ;;  %v3242_v62 = vsub.f32 %v2514_v15, %v2635_v14  ;;  %v1307_v51 = vadd.f32 %v1895_v29, %v1306_v47  ;;  %1748 = vmatprep.subr.bf16.mxu1 %v1747_v50  ;;  %v1243_v23 = vmul.f32 1.442695, %v3246_v11 }
 0x32f   : > { %v1905_v39 = vpop.eup %1904  ;;  %1924 = vpow2.f32 %v1223_v18  ;;  %v1753_v63 = vpack.c.bf16 %v1903_v8, %v2851_v13  ;;  %v3243_v18 = vsub.f32 %v2517_v19, %v2631_v35  ;;  %v1239_v53 = vmul.f32 1.442695, %v3244_v26  ;;  %1750 = vmatpush1.bf16.msra.mxu1 %v1749_v61 }
 0x330   : > { %v2865_v41 = vpop.eup %1906  ;;  %1926 = vpow2.f32 %v1225_v21  ;;  %v1751_v43 = vpack.c.bf16 %v1905_v39, %v1901_v17  ;;  %v1235_v4 = vmul.f32 1.442695, %v3242_v62  ;;  %v1344_v21 = vadd.f32 %v1897_v46, %v1343_v24 }
 0x331   : > { %v1909_v49 = vpop.eup %1908  ;;  %1928 = vpow2.f32 %v1227_v7  ;;  %v1237_v27 = vmul.f32 1.442695, %v3243_v18  ;;  %v1308_v9 = vadd.f32 %v2851_v13, %v1307_v51  ;;  %v1241_v19 = vmul.f32 1.442695, %v3245_v55 }
 0x332   : > { %v1911_v45 = vpop.eup %1910  ;;  %1930 = vpow2.f32 %v1229_v37  ;;  %v1345_v10 = vadd.f32 %v1901_v17, %v1344_v21  ;;  %v1245_v50 = vmul.f32 1.442695, %v3247_v59  ;;  %1752 = vmatprep.subr.bf16.mxu1 %v1751_v43  ;;  %v3248_v17 = vsub.f32 %v2532_v42, %v2635_v14 }
 0x333   : > { %v1913_v6 = vpop.eup %1912  ;;  %1932 = vpow2.f32 %v1231_v22  ;;  %v1757_v15 = vpack.c.bf16 %v1911_v45, %v2865_v41  ;;  %v1309_v16 = vadd.f32 %v1903_v8, %v1308_v9  ;;  %v3249_v61 = vsub.f32 %v3186_v44, %v2631_v35  ;;  %1754 = vmatpush1.bf16.msra.mxu1 %v1753_v63 }
 0x334   : > { %v2881_v29 = vpop.eup %1914  ;;  %1934 = vpow2.f32 %v1233_v2  ;;  %v1755_v46 = vpack.c.bf16 %v1913_v6, %v1909_v49  ;;  %v1346_v31 = vadd.f32 %v1905_v39, %v1345_v10  ;;  %v1247_v7 = vmul.f32 1.442695, %v3248_v17 }
 0x335   : > { %v1917_v57 = vpop.eup %1916  ;;  %1936 = vpow2.f32 %v1235_v4  ;;  %v1310_v40 = vadd.f32 %v2865_v41, %v1309_v16  ;;  %v1249_v38 = vmul.f32 1.442695, %v3249_v61  ;;  %v3250_v39 = vsub.f32 %v3187_v52, %v2635_v14 }
 0x336   : > { %v1919_v13 = vpop.eup %1918  ;;  %1938 = vpow2.f32 %v1237_v27  ;;  %v1347_v33 = vadd.f32 %v1909_v49, %v1346_v31  ;;  %v3251_v47 = vsub.f32 %v3188_v56, %v2631_v35  ;;  %1756 = vmatprep.subr.bf16.mxu1 %v1755_v46  ;;  %v3252_v2 = vsub.f32 %v3189_v1, %v2635_v14 }
 0x337   : > { %v1921_v0 = vpop.eup %1920  ;;  %1940 = vpow2.f32 %v1239_v53  ;;  %v1761_v30 = vpack.c.bf16 %v1919_v13, %v2881_v29  ;;  %v1251_v42 = vmul.f32 1.442695, %v3250_v39  ;;  %v1311_v54 = vadd.f32 %v1911_v45, %v1310_v40  ;;  %1758 = vmatpush1.bf16.msra.mxu1 %v1757_v15 }
 0x338   : > { %v2897_v8 = vpop.eup %1922  ;;  %1942 = vpow2.f32 %v1241_v19  ;;  %v1759_v37 = vpack.c.bf16 %v1921_v0, %v1917_v57  ;;  %v1253_v41 = vmul.f32 1.442695, %v3251_v47  ;;  %v1348_v32 = vadd.f32 %v1913_v6, %v1347_v33 }
 0x339   : > { %v1925_v20 = vpop.eup %1924  ;;  %1944 = vpow2.f32 %v1243_v23  ;;  %v1255_v24 = vmul.f32 1.442695, %v3252_v2  ;;  %v1312_v43 = vadd.f32 %v2881_v29, %v1311_v54  ;;  %v3253_v63 = vsub.f32 %v3190_v5, %v2631_v35 }
 0x33a   : > { %v1927_v22 = vpop.eup %1926  ;;  %1946 = vpow2.f32 %v1245_v50  ;;  %v1349_v62 = vadd.f32 %v1917_v57, %v1348_v32  ;;  %v3254_v45 = vsub.f32 %v3191_v12, %v2635_v14  ;;  %v3255_v21 = vsub.f32 %v3192_v58, %v2631_v35  ;;  %1760 = vmatprep.subr.bf16.mxu1 %v1759_v37  ;;  %v3258_v57 = vld [vmem:[#allocation27_spill] sm:$0xff]  ;;  %v3268_v32 = vld [vmem:[#allocation32_spill] sm:$0xff] }
 0x33b   : > { %v1929_v44 = vpop.eup %1928  ;;  %1948 = vpow2.f32 %v1247_v7  ;;  %v1765_v52 = vpack.c.bf16 %v1927_v22, %v2897_v8  ;;  %v1257_v56 = vmul.f32 1.442695, %v3253_v63  ;;  %v1313_v18 = vadd.f32 %v1919_v13, %v1312_v43  ;;  %1762 = vmatpush1.bf16.msra.mxu1 %v1761_v30  ;;  %v3260_v13 = vld [vmem:[#allocation28_spill] sm:$0xff]  ;;  %v3264_v30 = vld [vmem:[#allocation30_spill] sm:$0xff] }
 0x33c   : > { %v2913_v49 = vpop.eup %1930  ;;  %1950 = vpow2.f32 %v1249_v38  ;;  %v1763_v4 = vpack.c.bf16 %v1929_v44, %v1925_v20  ;;  %v1259_v1 = vmul.f32 1.442695, %v3254_v45  ;;  %v1261_v6 = vmul.f32 1.442695, %v3255_v21 }
 0x33d   : > { %v1933_v51 = vpop.eup %1932  ;;  %1952 = vpow2.f32 %v1251_v42  ;;  %v1350_v26 = vadd.f32 %v1921_v0, %v1349_v62  ;;  %v3256_v53 = vsub.f32 %v3193_v34, %v2635_v14  ;;  %v1314_v29 = vadd.f32 %v2897_v8, %v1313_v18  ;;  %v3262_v0 = vld [vmem:[#allocation29_spill] sm:$0xff]  ;;  %v3266_v42 = vld [vmem:[#allocation31_spill] sm:$0xff] }
 0x33e   : > { %v1935_v27 = vpop.eup %1934  ;;  %1954 = vpow2.f32 %v1253_v41  ;;  %v3257_v15 = vsub.f32 %v3194_v25, %v2631_v35  ;;  %v3259_v11 = vsub.f32 %v3258_v57, %v2635_v14  ;;  %v3261_v59 = vsub.f32 %v3260_v13, %v2631_v35  ;;  %1764 = vmatprep.subr.bf16.mxu1 %v1763_v4 }
 0x33f   : > { %v1937_v5 = vpop.eup %1936  ;;  %1956 = vpow2.f32 %v1255_v24  ;;  %v1263_v9 = vmul.f32 1.442695, %v3256_v53  ;;  %v1769_v12 = vpack.c.bf16 %v1935_v27, %v2913_v49  ;;  %v1351_v19 = vadd.f32 %v1925_v20, %v1350_v26  ;;  %1766 = vmatpush1.bf16.msra.mxu1 %v1765_v52  ;;  %v3272_v52 = vld [vmem:[#allocation34_spill] sm:$0xff] }
 0x340   : > { %v2929_v55 = vpop.eup %1938  ;;  %1958 = vpow2.f32 %v1257_v56  ;;  %v1265_v58 = vmul.f32 1.442695, %v3257_v15  ;;  %v1767_v10 = vpack.c.bf16 %v1937_v5, %v1933_v51  ;;  %v1267_v34 = vmul.f32 1.442695, %v3259_v11 }
 0x341   : > { %v1941_v46 = vpop.eup %1940  ;;  %1960 = vpow2.f32 %v1259_v1  ;;  %v1315_v23 = vadd.f32 %v1927_v22, %v1314_v29  ;;  %v1269_v50 = vmul.f32 1.442695, %v3261_v59  ;;  %v1352_v31 = vadd.f32 %v1929_v44, %v1351_v19  ;;  %v3277_v19 = vld [vmem:[#allocation37_spill] sm:$0xff] }
 0x342   : > { %v1943_v16 = vpop.eup %1942  ;;  %1962 = vpow2.f32 %v1261_v6  ;;  %v3263_v17 = vsub.f32 %v3262_v0, %v2635_v14  ;;  %v3265_v38 = vsub.f32 %v3264_v30, %v2631_v35  ;;  %v3267_v54 = vsub.f32 %v3266_v42, %v2635_v14  ;;  %1768 = vmatprep.subr.bf16.mxu1 %v1767_v10  ;;  %v3274_v6 = vld [vmem:[#allocation35_spill] sm:$0xff]  ;;  %v3281_v0 = vld [vmem:[#allocation40_spill] sm:$0xff] }
 0x343   : > { %v1945_v25 = vpop.eup %1944  ;;  %1964 = vpow2.f32 %v1263_v9  ;;  %v1316_v40 = vadd.f32 %v2913_v49, %v1315_v23  ;;  %v1773_v8 = vpack.c.bf16 %v1943_v16, %v2929_v55  ;;  %v1353_v37 = vadd.f32 %v1933_v51, %v1352_v31  ;;  %v3270_v49 = vld [vmem:[#allocation33_spill] sm:$0xff]  ;;  %1770 = vmatpush1.bf16.msra.mxu1 %v1769_v12 }
 0x344   : > { %v1271_v7 = vmul.f32 1.442695, %v3263_v17  ;;  %v2945_v61 = vpop.eup %1946  ;;  %1966 = vpow2.f32 %v1265_v58  ;;  %v1273_v33 = vmul.f32 1.442695, %v3265_v38  ;;  %v1771_v20 = vpack.c.bf16 %v1945_v25, %v1941_v46 }
 0x345   : > { %v1949_v39 = vpop.eup %1948  ;;  %1968 = vpow2.f32 %v1267_v34  ;;  %v1275_v22 = vmul.f32 1.442695, %v3267_v54  ;;  %v1317_v47 = vadd.f32 %v1935_v27, %v1316_v40  ;;  %v3269_v44 = vsub.f32 %v3268_v32, %v2631_v35 }
 0x346   : > { %v1951_v41 = vpop.eup %1950  ;;  %1970 = vpow2.f32 %v1269_v50  ;;  %v1354_v24 = vadd.f32 %v1937_v5, %v1353_v37  ;;  %v3271_v63 = vsub.f32 %v3270_v49, %v2635_v14  ;;  %v3273_v45 = vsub.f32 %v3272_v52, %v2631_v35  ;;  %1772 = vmatprep.subr.bf16.mxu1 %v1771_v20 }
 0x347   : > { %v1277_v2 = vmul.f32 1.442695, %v3269_v44  ;;  %v1953_v43 = vpop.eup %1952  ;;  %1972 = vpow2.f32 %v1271_v7  ;;  %v1318_v62 = vadd.f32 %v2929_v55, %v1317_v47  ;;  %v1777_v4 = vpack.c.bf16 %v1951_v41, %v2945_v61  ;;  %1774 = vmatpush1.bf16.msra.mxu1 %v1773_v8 }
 0x348   : > { %v1279_v56 = vmul.f32 1.442695, %v3271_v63  ;;  %v2961_v51 = vpop.eup %1954  ;;  %1974 = vpow2.f32 %v1273_v33  ;;  %v1281_v1 = vmul.f32 1.442695, %v3273_v45  ;;  %v1355_v18 = vadd.f32 %v1941_v46, %v1354_v24 }
 0x349   : > { %v1775_v27 = vpack.c.bf16 %v1953_v43, %v1949_v39  ;;  %v1957_v21 = vpop.eup %1956  ;;  %1976 = vpow2.f32 %v1275_v22  ;;  %v3275_v26 = vsub.f32 %v3274_v6, %v2635_v14  ;;  %v1319_v53 = vadd.f32 %v1943_v16, %v1318_v62 }
 0x34a   : > { %v1959_v9 = vpop.eup %1958  ;;  %1978 = vpow2.f32 %v1277_v2  ;;  %v3276_v29 = vsub.f32 %v3204_v28, %v2631_v35  ;;  %v1356_v15 = vadd.f32 %v1945_v25, %v1355_v18  ;;  %v3278_v10 = vsub.f32 %v3277_v19, %v2635_v14 }
 0x34b   : > { %v1283_v5 = vmul.f32 1.442695, %v3275_v26  ;;  %v1961_v58 = vpop.eup %1960  ;;  %1980 = vpow2.f32 %v1279_v56  ;;  %v1320_v57 = vadd.f32 %v2945_v61, %v1319_v53  ;;  %v1781_v11 = vpack.c.bf16 %v1959_v9, %v2961_v51  ;;  %1776 = vmatprep.subr.bf16.mxu1 %v1775_v27  ;;  %v3283_v61 = vld [vmem:[#allocation41_spill] sm:$0xff] }
 0x34c   : > { %v1285_v55 = vmul.f32 1.442695, %v3276_v29  ;;  %v1287_v46 = vmul.f32 1.442695, %v3278_v10  ;;  %v1963_v34 = vpop.eup %1962  ;;  %1982 = vpow2.f32 %v1281_v1  ;;  %v3279_v12 = vsub.f32 %v3206_v60, %v2631_v35  ;;  %1778 = vmatpush1.bf16.msra.mxu1 %v1777_v4 }
 0x34d   : > { %v1357_v28 = vadd.f32 %v1949_v39, %v1356_v15  ;;  %v1779_v16 = vpack.c.bf16 %v1961_v58, %v1957_v21  ;;  %v1965_v13 = vpop.eup %1964  ;;  %1984 = vpow2.f32 %v1283_v5  ;;  %v3280_v59 = vsub.f32 %v3207_v3, %v2635_v14 }
 0x34e   : > { %v1289_v23 = vmul.f32 1.442695, %v3279_v12  ;;  %v1321_v31 = vadd.f32 %v1951_v41, %v1320_v57  ;;  %v1967_v25 = vpop.eup %1966  ;;  %1986 = vpow2.f32 %v1285_v55  ;;  %v3282_v17 = vsub.f32 %v3281_v0, %v2631_v35 }
 0x34f   : > { %v1291_v50 = vmul.f32 1.442695, %v3280_v59  ;;  %v1358_v40 = vadd.f32 %v1953_v43, %v1357_v28  ;;  %v1969_v60 = vpop.eup %1968  ;;  %1988 = vpow2.f32 %v1287_v46  ;;  %v3284_v30 = vsub.f32 %v3283_v61, %v2635_v14  ;;  %1780 = vmatprep.subr.bf16.mxu1 %v1779_v16  ;;  %v486_v61 = vpop.permute.xlu0 %485 }
 0x350   : > { %v1293_v7 = vmul.f32 1.442695, %v3282_v17  ;;  %v1322_v33 = vadd.f32 %v2961_v51, %v1321_v31  ;;  %v1785_v3 = vpack.c.bf16 %v1967_v25, %v1963_v34  ;;  %v1971_v37 = vpop.eup %1970  ;;  %1990 = vpow2.f32 %v1289_v23  ;;  %1782 = vmatpush1.bf16.msra.mxu1 %v1781_v11  ;;  %v3287_v31 = vld [vmem:[#allocation44_spill] sm:$0xff] }
 0x351   : > { %v1295_v38 = vmul.f32 1.442695, %v3284_v30  ;;  %v3285_v8 = vsub.f32 %v3210_v48, %v2631_v35  ;;  %v1359_v39 = vadd.f32 %v1957_v21, %v1358_v40  ;;  %v1783_v42 = vpack.c.bf16 %v1969_v60, %v1965_v13  ;;  %v1973_v54 = vpop.eup %1972  ;;  %v3290_v30 = vld [vmem:[#allocation14_spill] sm:$0xff] }
 0x352   : > { %1992 = vpow2.f32 %v1291_v50  ;;  %v3286_v22 = vsub.f32 %v2610_v36, %v2635_v14  ;;  %v1323_v41 = vadd.f32 %v1959_v9, %v1322_v33  ;;  %v1975_v32 = vpop.eup %1974 }
 0x353   : > { %v1297_v20 = vmul.f32 1.442695, %v3285_v8  ;;  %1994 = vpow2.f32 %v1293_v7  ;;  %v1360_v44 = vadd.f32 %v1961_v58, %v1359_v39  ;;  %v1977_v2 = vpop.eup %1976  ;;  %v1789_v43 = vpack.c.bf16 %v1975_v32, %v1971_v37  ;;  %1784 = vmatprep.subr.bf16.mxu1 %v1783_v42 }
 0x354   : > { %v1299_v47 = vmul.f32 1.442695, %v3286_v22  ;;  %1996 = vpow2.f32 %v1295_v38  ;;  %v1324_v24 = vadd.f32 %v1963_v34, %v1323_v41  ;;  %v1979_v35 = vpop.eup %1978  ;;  %v1787_v49 = vpack.c.bf16 %v1977_v2, %v1973_v54  ;;  %1786 = vmatpush1.bf16.msra.mxu1 %v1785_v3  ;;  %v3291_v38 = vld [vmem:[#allocation13_spill] sm:$0xff] }
 0x355   : > { %1998 = vpow2.f32 %v1297_v20  ;;  %v1361_v48 = vadd.f32 %v1965_v13, %v1360_v44  ;;  %v1981_v63 = vpop.eup %1980  ;;  %v571_v33 = vadd.f32 %v3291_v38, %v3290_v30 }
 0x356   : > { %2000 = vpow2.f32 %v1299_v47  ;;  %v1325_v56 = vadd.f32 %v1967_v25, %v1324_v24  ;;  %v1983_v36 = vpop.eup %1982  ;;  %1788 = vmatprep.subr.bf16.mxu1 %v1787_v49  ;;  %v3288_v25 = vld [vmem:[#allocation47_spill] sm:$0xff] }
 0x357   : > { %v1362_v14 = vadd.f32 %v1969_v60, %v1361_v48  ;;  %v1985_v62 = vpop.eup %1984  ;;  %v1793_v51 = vpack.c.bf16 %v1983_v36, %v1979_v35  ;;  %v3289_v0 = vsub.f32 %v3287_v31, %v3288_v25  ;;  %v3294_v48 = vld [vmem:[#allocation43_spill] sm:$0xff] }
 0x358   : > { %v1326_v4 = vadd.f32 %v1971_v37, %v1325_v56  ;;  %v1987_v52 = vpop.eup %1986  ;;  %v1791_v1 = vpack.c.bf16 %v1985_v62, %v1981_v63  ;;  %1790 = vmatpush1.bf16.msra.mxu1 %v1789_v43  ;;  %v3292_v37 = vld [vmem:[#allocation16_spill] sm:$0xff]  ;;  %v1541_v31 = vld [vmem:[%s2302_s22 + $0x10] sm:$0xff] }
 0x359   : > { %v1363_v45 = vadd.f32 %v1973_v54, %v1362_v14  ;;  %v1989_v18 = vpop.eup %1988  ;;  %v1096_v17 = vmul.f32 1.442695, %v3289_v0  ;;  %v579_v8 = vadd.f32 %v3292_v37, %v486_v61  ;;  %v3293_v54 = vld [vmem:[#allocation15_spill] sm:$0xff] }
 0x35a   : > { %v1327_v27 = vadd.f32 %v1975_v32, %v1326_v4  ;;  %v1991_v21 = vpop.eup %1990  ;;  %1792 = vmatprep.subr.bf16.mxu1 %v1791_v1  ;;  %v577_v22 = vadd.f32 %v3293_v54, %v486_v61 }
 0x35b   : > { %v1364_v6 = vadd.f32 %v1977_v2, %v1363_v45  ;;  %v1797_v53 = vpack.c.bf16 %v1991_v21, %v1987_v52  ;;  %2002 = vpow2.f32 %v1096_v17  ;;  %v3296_v45 = vld [vmem:[#allocation45_spill] sm:$0xff]  ;;  %v1542_v17 = vld [vmem:[%s2302_s22 + $0x18] sm:$0xff] }
 0x35c   : > { %v1993_v26 = vpop.eup %1992  ;;  %v1328_v5 = vadd.f32 %v1979_v35, %v1327_v27  ;;  %1794 = vmatpush1.bf16.msra.mxu1 %v1793_v51  ;;  %v1301_v35 = vld [vmem:[#allocation4] sm:$0x3] }
 0x35d   : > { %v1995_v9 = vpop.eup %1994  ;;  %v1365_v29 = vadd.f32 %v1981_v63, %v1364_v6  ;;  %v1795_v55 = vpack.c.bf16 %v1993_v26, %v1989_v18 }
 0x35e   : > { %v1997_v15 = vpop.eup %1996  ;;  %v1329_v58 = vadd.f32 %v1983_v36, %v1328_v5 }
 0x35f   : > { %v1999_v19 = vpop.eup %1998  ;;  %v1366_v10 = vadd.f32 %v1985_v62, %v1365_v29  ;;  %1796 = vmatprep.subr.bf16.mxu1 %v1795_v55  ;;  %v1534_v55 = vstv %s1514_s21 }
 0x360   : > { %v2001_v46 = vpop.eup %2000  ;;  %v1330_v57 = vadd.f32 %v1987_v52, %v1329_v58  ;;  %v1801_v11 = vpack.c.bf16 %v1999_v19, %v1995_v9  ;;  %1798 = vmatpush1.bf16.msra.mxu1 %v1797_v53 }
 0x361   : > { %v1367_v34 = vadd.f32 %v1989_v18, %v1366_v10  ;;  %v1799_v12 = vpack.c.bf16 %v2001_v46, %v1997_v15  ;;  %v3297_v18 = vld [vmem:[#allocation46_spill] sm:$0xff]  ;;  %v1539_v10 = vld [vmem:[%s2302_s22] sm:$0xff] }
 0x362   : > { %v1331_v23 = vadd.f32 %v1991_v21, %v1330_v57 }
 0x363   : > { %v1368_v28 = vadd.f32 %v1993_v26, %v1367_v34  ;;  %1800 = vmatprep.subr.bf16.mxu1 %v1799_v12  ;;  %v1540_v34 = vld [vmem:[%s2302_s22 + $0x8] sm:$0xff]  ;;  %s2127_s22 = smov [#allocation10]  }
 0x364   : > { %v1332_v16 = vadd.f32 %v1995_v9, %v1331_v23  ;;  %1802 = vmatpush1.bf16.msra.mxu1 %v1801_v11  ;;  %s2040_s24 = sshll.u32 %s2127_s22, 4  ;;  %s2041_s24 = int_to_ptr.vmem [resolvable:$false] %s2040_s24 }
 0x365   : > { %v1369_v13 = vadd.f32 %v1997_v15, %v1368_v28  ;;  %v2003_v43 = vpop.eup %2002  ;;  %s2042_s13 = scalar_lea.vmem %s2041_s24, 1024  ;;  %p2043_p13 = scmp.lt.s32.totalorder %s3018_s23, %s2041_s24 }
 0x366   : > { %v1333_v59 = vadd.f32 %v1999_v19, %v1332_v16  ;;  %v1302_v63 = vmul.f32 %v2003_v43, %v1301_v35  ;;  %v1409_v1 = vrot.slane %v2003_v43, %v3296_v45  ;;  %v1413_v27 = vrot.slane %v2003_v43, %v3297_v18  ;;  %p2044_p2 = scmp.lt.s32.totalorder %s2042_s13, %s2036_s14 }
 0x367   : > { %v1370_v50 = vadd.f32 %v2001_v46, %v1369_v13  ;;  %1485 = vmatmul.mubr.f32.vlgmr.msra.gmra.mrb[8].mxu1 %v571_v33 }
 0x368   : > { %v1334_v7 = vrot.slane %v1333_v59, 4  ;;  %1490 = vmatprep.mubr.f32.mxu1 %v579_v8  ;;  %v1416_v6 = vmul.f32 0.0, %v1409_v1  ;;  %v1417_v5 = vmul.f32 0.0, %v1413_v27  ;;  %p2045_p5 = por %p2044_p2, %p2043_p13 }
 0x369   : > { %v1371_v40 = vrot.slane %v1370_v50, 4 }
 0x36a   : > { %v1335_v60 = vadd.f32 %v1334_v7, %v1333_v59  ;;  %p2046_p4 = pnand %p2045_p5, %p2039_p6 }
 0x36b   : > { %v1372_v3 = vadd.f32 %v1371_v40, %v1370_v50  ;;  %1491 = vmatmul.mubr.f32.gmra.mrb[10].mxu1 %v577_v22 }
 0x36c   : > { %v1336_v20 = vrot.slane %v1335_v60, 2 }
 0x36d   : > { %v1373_v39 = vrot.slane %v1372_v3, 2 }
 0x36e   : > { %v1337_v42 = vadd.f32 %v1336_v20, %v1335_v60 }
 0x36f   : > { %v1374_v47 = vadd.f32 %v1373_v39, %v1372_v3 }
 0x370   : > { %v1338_v41 = vrot.slane %v1337_v42, 1 }
 0x371   : > { %v1375_v32 = vrot.slane %v1374_v47, 1 }
 0x372   : > { %v1339_v44 = vadd.f32 %v1338_v41, %v1337_v42 }
 0x373   : > { %v1376_v2 = vadd.f32 %v1375_v32, %v1374_v47 }
 0x375   : > { %v1379_v24 = vcombine.low %v1339_v44, %v1376_v2 }
 0x377   : > { %v1386_v49 = vrot.slane %v1379_v24, %v3294_v48 }
 0x379   : > { %v1393_v56 = vrot.slane %v1386_v49, %v3294_v48 }
 0x37b   : > { %v1395_v36 = vadd.f32 %v1393_v56, %v1302_v63 }
 0x37d   : > { %1400 = vst.msk [vmem:[#allocation4] sm:$0x3] %vm2428_vm2, %v1395_v36 }
 0x384   : > { %v1509_v62 = vld [vmem:[#allocation4] sm:$0x3] }
 0x385   : > { %2004 = vrcp.f32 %v1509_v62 }
 0x38f   : > { %v2005_v4 = vpop.eup %2004 }
 0x390   : > { %v1511_v51 = vmul.f32 %v2005_v4, %v1509_v62 }
 0x392   : > { %v1512_v52 = vsub.f32 2.0, %v1511_v51 }
 0x394   : > { %v1513_v21 = vmul.f32 %v2005_v4, %v1512_v52 }
 0x396   : > { %v1523_v9 = vrot.slane %v1513_v21, %v3296_v45  ;;  %v1527_v58 = vrot.slane %v1513_v21, %v3297_v18 }
 0x43a   : > { %v1486_v26 = vpop.f32.mrb[8].mxu1 }
 0x43b   : > { %v1497_v53 = vadd.f32 %v1486_v26, %v1416_v6  ;;  %v1488_v29 = vpop.f32.mrb[9].mxu1 }
 0x43c   : > { %v1498_v15 = vadd.f32 %v1488_v29, %v1417_v5 }
 0x43d   : > { %v1530_v19 = vmul.f32 %v1523_v9, %v1497_v53 }
 0x43e   : > { %v1531_v46 = vmul.f32 %v1527_v58, %v1498_v15  ;;  %v1492_v57 = vpop.f32.mrb[10].mxu1 }
 0x43f   : > { %v1535_v11 = vmul.f32 %v1534_v55, %v1530_v19  ;;  %v1499_v12 = vadd.f32 %v1492_v57, %v1416_v6  ;;  %v1494_v23 = vpop.f32.mrb[11].mxu1 }
 0x440   : > { %v1536_v28 = vmul.f32 %v1534_v55, %v1531_v46  ;;  %v1500_v16 = vadd.f32 %v1494_v23, %v1417_v5 }
 0x441   : > { %v1543_v13 = vadd.f32 %v1539_v10, %v1535_v11  ;;  %v1532_v59 = vmul.f32 %v1523_v9, %v1499_v12 }
 0x442   : > { %v1544_v50 = vadd.f32 %v1540_v34, %v1536_v28  ;;  %v1533_v25 = vmul.f32 %v1527_v58, %v1500_v16 }
 0x443   : > { %1547 = vst [vmem:[%s348_s18] sm:$0xff] %v1543_v13  ;;  %v1537_v0 = vmul.f32 %v1534_v55, %v1532_v59 }
 0x444   : > { %1548 = vst [vmem:[%s348_s18 + $0x8] sm:$0xff] %v1544_v50  ;;  %v1538_v7 = vmul.f32 %v1534_v55, %v1533_v25 }
 0x445   : > { %v1545_v40 = vadd.f32 %v1541_v31, %v1537_v0 }
 0x446   : > { %v1546_v60 = vadd.f32 %v1542_v17, %v1538_v7 }
 0x447   : > { %1549 = vst [vmem:[%s348_s18 + $0x10] sm:$0xff] %v1545_v40 }
 0x448   : > { %1550 = vst [vmem:[%s348_s18 + $0x18] sm:$0xff] %v1546_v60 }
 0x449   : > { %2049 = shalt.err (!%p2046_p4)
}
 0x44a   : > { %s2050_s11 = scalar_lea.hbm %s3023_s9, 512  ;;  %s2054_s18 = scalar_lea.hbm %s3079_s7, 1024 }
 0x44b   : > { %p2051_p7 = scmp.ne.s32.totalorder %s3023_s9, %s2050_s11  ;;  %p2055_p1 = scmp.lt.u32.totalorder %s3023_s9, %s3079_s7 }
 0x44c   : > { %p2056_p3 = scmp.lt.u32.totalorder %s2054_s18, %s2050_s11  ;;  %p2058_p8 = scmp.lt.u32.totalorder %s2050_s11, %s3023_s9 }
 0x44d   : > { %p2052_p10 = pnand %p2051_p7, %p3298_p11 }
 0x44e   : > { %p2057_p9 = por %p2056_p3, %p2055_p1 }
 0x44f   : > { %p2053_p12 = pneg %p2052_p10 }
 0x450   : > { %p2059_p0 = por %p2058_p8, %p2057_p9 }
 0x452   : > { %p2060_p6 = pnand %p2059_p0, %p2053_p12 }
 0x454   : > { %2063 = shalt.err (!%p2060_p6)
}
 0x455   : > { %s2128_s6 = smov 256   ;;  %s2129_s14 = smov 16  }
 0x456   : > { %1805 = dma.vmem_to_hbm [thread:$0]  (%p3298_p11), %s3018_s23, 512, %s3023_s9, %s1552_s29, %s2128_s6, %s2128_s6, %s2129_s14  }
 0x457 PF: > { %s1582_s22 = sand.u32 1, %s2098_s26   ;;  %p3299_p13 = scmp.ne.s32.totalorder %s3145_s17, 0 }
 0x458   : > { %p3300_p2 = scmp.ge.s32.totalorder %s2118_s8, 2  ;;  %s1583_s24 = scalar_lea.sflag [#allocation9], %s1582_s22 }
 0x45a   : > { %p1812_p5 = pnand %p3300_p2, %p3299_p13 }
 0x45c   : > { %2093 = dma.done.wait (!%p1812_p5), %s1583_s24, 512  }
 0x45d   : > { %2095 = vsyncadd (!%p1812_p5), %s1583_s24, 4294966784  ;;  %s24_s8 = sadd.s32 1, %s2118_s8   ;;  %s3301_s26 = smov %s2102_s27 }
 0x45e   : > { %p21_p4 = scmp.ge.s32.totalorder %s24_s8, 4   ;;  %s3302_s27 = smov %s2106_s28 }
 0x45f   : > { %s3303_s28 = smov %s2229_s16  ;;  %s3304_s29 = smov %s2114_s30 }
 0x460   : > { %s3305_s30 = smov %s3307_s10  ;;  %23 = sbr.rel (!%p21_p4) target bundleno = 8 (0x8), region = 104 }
 0x467   :  { %1588 = vsyncpa [#allocation8], 1 }
 0x468   :  { %1590 = vsyncpa [#allocation8 + $0x1], 1 }
 0x469   :  { %1591 = vsyncpa [#allocation9], 1 }
 0x46a   :  { %1593 = vsyncpa [#allocation9 + $0x1], 1 }

</bundles_post_ra>
